<compile_context>
chip_gen: v7x
topology: tpu7x:2x2x1
jax: 0.10.0
libtpu: 0.0.40
codegen_flags: <defaults>
</compile_context>

<pallas_src>
import functools

import jax
import jax.numpy as jnp
from jax.experimental import pallas as pl
from jax.experimental.pallas import tpu as pltpu


def _round_up(x, m):
    return (x + m - 1) // m * m


def _fused_mlp_kernel(*refs, num_blocks):
    """Fused DecoderMLP over one row tile.

    refs layout: x_ref, (w, b, gamma, beta) * num_blocks, o_ref
      x_ref: (TM, K_in)
      w:     (K, H)   dense weight, K-major (already transposed)
      b/gamma/beta: (1, H)
      o_ref: (TM, H)
    """
    x_ref = refs[0]
    o_ref = refs[-1]
    layer_refs = refs[1:-1]

    h = x_ref[...].astype(jnp.float32)
    for blk in range(num_blocks):
        w_ref, b_ref, g_ref, be_ref = layer_refs[4 * blk: 4 * blk + 4]
        w = w_ref[...]
        b = b_ref[...]
        g = g_ref[...]
        be = be_ref[...]
        k_dim = w.shape[0]

        if k_dim == 1:
            # Degenerate contraction: (TM, 1) * (1, H) outer product on the VPU —
            # avoids wasting the MXU on a 1-lane contraction.
            y = h * w + b
        else:
            # Hot path on the MXU, f32 accumulate.
            y = jnp.dot(h, w, preferred_element_type=jnp.float32) + b

        # LayerNorm over the feature (lane) axis; eps matches nn.LayerNorm default.
        mean = jnp.mean(y, axis=-1, keepdims=True)
        centered = y - mean
        var = jnp.mean(centered * centered, axis=-1, keepdims=True)
        y_norm = centered * jax.lax.rsqrt(var + 1e-5)

        # Affine + ReLU.
        h = jnp.maximum(y_norm * g + be, 0.0)

    o_ref[...] = h.astype(o_ref.dtype)


def decoder_mlp_fused(x2d, params, *, tm=512):
    """x2d: (M, K_in) float32; params: list of (w_kh, bias, gamma, beta) with
    w_kh already in (K, H) layout. Returns (M, H) float32."""
    M, K_in = x2d.shape
    H = params[0][0].shape[1]
    num_blocks = len(params)

    # Row tile: multiple of 8 (f32 sublanes); shrink for small inputs.
    tm = min(tm, _round_up(M, 8))
    M_pad = _round_up(M, tm)
    if M_pad != M:
        x2d = jnp.pad(x2d, ((0, M_pad - M), (0, 0)))

    in_specs = [pl.BlockSpec((tm, K_in), lambda i: (i, 0))]
    args = [x2d]
    for (w_kh, bias, gamma, beta) in params:
        K = w_kh.shape[0]
        in_specs += [
            pl.BlockSpec((K, H), lambda i: (0, 0)),   # resident across row tiles
            pl.BlockSpec((1, H), lambda i: (0, 0)),
            pl.BlockSpec((1, H), lambda i: (0, 0)),
            pl.BlockSpec((1, H), lambda i: (0, 0)),
        ]
        args += [w_kh, bias.reshape(1, H), gamma.reshape(1, H), beta.reshape(1, H)]

    kernel = functools.partial(_fused_mlp_kernel, num_blocks=num_blocks)

    out = pl.pallas_call(
        kernel,
        out_shape=jax.ShapeDtypeStruct((M_pad, H), jnp.float32),
        grid_spec=pltpu.PrefetchScalarGridSpec(
            num_scalar_prefetch=0,
            grid=(M_pad // tm,),
            in_specs=in_specs,
            out_specs=pl.BlockSpec((tm, H), lambda i: (i, 0)),
        ),
        compiler_params=pltpu.CompilerParams(
            # Row tiles are independent -> shard across TensorCores on v7x.
            dimension_semantics=("parallel",),
        ),
    )(*args)

    if M_pad != M:
        out = out[:M]
    return out


def init_decoder_mlp_params(key, num_blocks=3, in_features=1, hidden_features=512):
    """Deterministic init matching PyTorch module shapes.

    Linear: weight (out, in) ~ U(-1/sqrt(in), 1/sqrt(in)), bias same range.
    LayerNorm: gamma=1, beta=0.
    Weights are stored pre-transposed as (K, H) so no transpose happens per forward.
    """
    params = []
    in_dim = in_features
    out_dim = hidden_features
    for _ in range(num_blocks):
        key, kw, kb = jax.random.split(key, 3)
        bound = 1.0 / jnp.sqrt(jnp.float32(in_dim))
        weight = jax.random.uniform(kw, (out_dim, in_dim), jnp.float32,
                                    minval=-bound, maxval=bound)
        bias = jax.random.uniform(kb, (out_dim,), jnp.float32,
                                  minval=-bound, maxval=bound)
        gamma = jnp.ones((out_dim,), jnp.float32)
        beta = jnp.zeros((out_dim,), jnp.float32)
        params.append((weight.T, bias, gamma, beta))  # store (K, H)
        in_dim = out_dim
    return params


@jax.jit
def decoder_mlp_forward_jit(x, params_flat):
    BV, F, K_in = x.shape
    h = x.reshape(BV * F, K_in)
    h = decoder_mlp_fused(h, list(params_flat))
    H = params_flat[-1][0].shape[1]
    return h.reshape(BV, F, H)


def decoder_mlp_forward(x, params):
    return decoder_mlp_forward_jit(x, tuple(params))


def _reference_forward(x, params):
    """Pure-JAX reference for correctness check (params are (K,H) layout)."""
    h = x
    for (w_kh, bias, gamma, beta) in params:
        y = jnp.einsum("bfk,kh->bfh", h, w_kh) + bias
        mean = jnp.mean(y, axis=-1, keepdims=True)
        var = jnp.mean((y - mean) ** 2, axis=-1, keepdims=True)
        yn = (y - mean) / jnp.sqrt(var + 1e-5)
        h = jnp.maximum(yn * gamma + beta, 0.0)
    return h


if __name__ == "__main__":
    # Small shapes consistent with the forward: (batch*voices, frames, in_features)
    BV, FRAMES, IN_FEATURES, HIDDEN, NUM_BLOCKS = 2, 8, 1, 512, 3

    key = jax.random.PRNGKey(0)
    key, kx = jax.random.split(key)
    x = jax.random.normal(kx, (BV, FRAMES, IN_FEATURES), jnp.float32)

    params = init_decoder_mlp_params(key, num_blocks=NUM_BLOCKS,
                                     in_features=IN_FEATURES,
                                     hidden_features=HIDDEN)

    out = decoder_mlp_forward(x, params)
    out = jax.block_until_ready(out)

    ref = _reference_forward(x, params)
    assert out.shape == (BV, FRAMES, HIDDEN), out.shape
    assert jnp.allclose(out, ref, atol=1e-4, rtol=1e-4), "mismatch vs reference"

    print("KERNEL_OK")
</pallas_src>

<mosaic_0001>
module attributes {stable_mosaic.version = 11 : i64} {
  func.func @_fused_mlp_kernel(%arg0: i32, %arg1: memref<16x1xf32, #tpu.memory_space<vmem>>, %arg2: memref<1x512xf32, #tpu.memory_space<vmem>>, %arg3: memref<1x512xf32, #tpu.memory_space<vmem>>, %arg4: memref<1x512xf32, #tpu.memory_space<vmem>>, %arg5: memref<1x512xf32, #tpu.memory_space<vmem>>, %arg6: memref<512x512xf32, #tpu.memory_space<vmem>>, %arg7: memref<1x512xf32, #tpu.memory_space<vmem>>, %arg8: memref<1x512xf32, #tpu.memory_space<vmem>>, %arg9: memref<1x512xf32, #tpu.memory_space<vmem>>, %arg10: memref<512x512xf32, #tpu.memory_space<vmem>>, %arg11: memref<1x512xf32, #tpu.memory_space<vmem>>, %arg12: memref<1x512xf32, #tpu.memory_space<vmem>>, %arg13: memref<1x512xf32, #tpu.memory_space<vmem>>, %arg14: memref<16x512xf32, #tpu.memory_space<vmem>>) attributes {dimension_semantics = [#tpu.dimension_semantics<parallel>], iteration_bounds = array<i64: 1>, scalar_prefetch = 0 : i64, scratch_operands = 0 : i64, tpu.core_type = #tpu.core_type<tc>, window_params = [{transform_indices = @transform_0, window_bounds = array<i64: 16, 1>}, {pipeline_mode = #tpu.pipeline_mode<synchronous>, transform_indices = @transform_1, window_bounds = array<i64: 1, 512>}, {pipeline_mode = #tpu.pipeline_mode<synchronous>, transform_indices = @transform_2, window_bounds = array<i64: 1, 512>}, {pipeline_mode = #tpu.pipeline_mode<synchronous>, transform_indices = @transform_3, window_bounds = array<i64: 1, 512>}, {pipeline_mode = #tpu.pipeline_mode<synchronous>, transform_indices = @transform_4, window_bounds = array<i64: 1, 512>}, {pipeline_mode = #tpu.pipeline_mode<synchronous>, transform_indices = @transform_5, window_bounds = array<i64: 512, 512>}, {pipeline_mode = #tpu.pipeline_mode<synchronous>, transform_indices = @transform_6, window_bounds = array<i64: 1, 512>}, {pipeline_mode = #tpu.pipeline_mode<synchronous>, transform_indices = @transform_7, window_bounds = array<i64: 1, 512>}, {pipeline_mode = #tpu.pipeline_mode<synchronous>, transform_indices = @transform_8, window_bounds = array<i64: 1, 512>}, {pipeline_mode = #tpu.pipeline_mode<synchronous>, transform_indices = @transform_9, window_bounds = array<i64: 512, 512>}, {pipeline_mode = #tpu.pipeline_mode<synchronous>, transform_indices = @transform_10, window_bounds = array<i64: 1, 512>}, {pipeline_mode = #tpu.pipeline_mode<synchronous>, transform_indices = @transform_11, window_bounds = array<i64: 1, 512>}, {pipeline_mode = #tpu.pipeline_mode<synchronous>, transform_indices = @transform_12, window_bounds = array<i64: 1, 512>}, {transform_indices = @transform_13, window_bounds = array<i64: 16, 512>}]} {
    %c0 = arith.constant 0 : index
    %c0_0 = arith.constant 0 : index
    %0 = vector.load %arg1[%c0, %c0_0] : memref<16x1xf32, #tpu.memory_space<vmem>>, vector<16x1xf32>
    %c0_1 = arith.constant 0 : index
    %c0_2 = arith.constant 0 : index
    %1 = vector.load %arg2[%c0_1, %c0_2] : memref<1x512xf32, #tpu.memory_space<vmem>>, vector<1x512xf32>
    %c0_3 = arith.constant 0 : index
    %c0_4 = arith.constant 0 : index
    %2 = vector.load %arg3[%c0_3, %c0_4] : memref<1x512xf32, #tpu.memory_space<vmem>>, vector<1x512xf32>
    %c0_5 = arith.constant 0 : index
    %c0_6 = arith.constant 0 : index
    %3 = vector.load %arg4[%c0_5, %c0_6] : memref<1x512xf32, #tpu.memory_space<vmem>>, vector<1x512xf32>
    %c0_7 = arith.constant 0 : index
    %c0_8 = arith.constant 0 : index
    %4 = vector.load %arg5[%c0_7, %c0_8] : memref<1x512xf32, #tpu.memory_space<vmem>>, vector<1x512xf32>
    %5 = vector.broadcast %0 : vector<16x1xf32> to vector<16x512xf32>
    %6 = vector.broadcast %1 : vector<1x512xf32> to vector<16x512xf32>
    %7 = arith.mulf %5, %6 : vector<16x512xf32>
    %8 = vector.broadcast %2 : vector<1x512xf32> to vector<16x512xf32>
    %9 = arith.addf %7, %8 : vector<16x512xf32>
    %cst = arith.constant dense<0.000000e+00> : vector<16xf32>
    %10 = vector.multi_reduction <add>, %9, %cst [1] : vector<16x512xf32> to vector<16xf32>
    %11 = vector.shape_cast %10 : vector<16xf32> to vector<16x1xf32>
    %cst_9 = arith.constant 5.120000e+02 : f32
    %12 = vector.broadcast %cst_9 : f32 to vector<16x1xf32>
    %13 = arith.divf %11, %12 : vector<16x1xf32>
    %14 = vector.broadcast %13 : vector<16x1xf32> to vector<16x512xf32>
    %15 = arith.subf %9, %14 : vector<16x512xf32>
    %16 = arith.mulf %15, %15 : vector<16x512xf32>
    %cst_10 = arith.constant dense<0.000000e+00> : vector<16xf32>
    %17 = vector.multi_reduction <add>, %16, %cst_10 [1] : vector<16x512xf32> to vector<16xf32>
    %18 = vector.shape_cast %17 : vector<16xf32> to vector<16x1xf32>
    %cst_11 = arith.constant 5.120000e+02 : f32
    %19 = vector.broadcast %cst_11 : f32 to vector<16x1xf32>
    %20 = arith.divf %18, %19 : vector<16x1xf32>
    %cst_12 = arith.constant 9.99999974E-6 : f32
    %21 = vector.broadcast %cst_12 : f32 to vector<16x1xf32>
    %22 = arith.addf %20, %21 : vector<16x1xf32>
    %23 = math.rsqrt %22 : vector<16x1xf32>
    %24 = vector.broadcast %23 : vector<16x1xf32> to vector<16x512xf32>
    %25 = arith.mulf %15, %24 : vector<16x512xf32>
    %26 = vector.broadcast %3 : vector<1x512xf32> to vector<16x512xf32>
    %27 = arith.mulf %25, %26 : vector<16x512xf32>
    %28 = vector.broadcast %4 : vector<1x512xf32> to vector<16x512xf32>
    %29 = arith.addf %27, %28 : vector<16x512xf32>
    %cst_13 = arith.constant 0.000000e+00 : f32
    %30 = vector.broadcast %cst_13 : f32 to vector<16x512xf32>
    %31 = arith.maximumf %29, %30 : vector<16x512xf32>
    %c0_14 = arith.constant 0 : index
    %c0_15 = arith.constant 0 : index
    %32 = vector.load %arg6[%c0_14, %c0_15] : memref<512x512xf32, #tpu.memory_space<vmem>>, vector<512x512xf32>
    %c0_16 = arith.constant 0 : index
    %c0_17 = arith.constant 0 : index
    %33 = vector.load %arg7[%c0_16, %c0_17] : memref<1x512xf32, #tpu.memory_space<vmem>>, vector<1x512xf32>
    %c0_18 = arith.constant 0 : index
    %c0_19 = arith.constant 0 : index
    %34 = vector.load %arg8[%c0_18, %c0_19] : memref<1x512xf32, #tpu.memory_space<vmem>>, vector<1x512xf32>
    %c0_20 = arith.constant 0 : index
    %c0_21 = arith.constant 0 : index
    %35 = vector.load %arg9[%c0_20, %c0_21] : memref<1x512xf32, #tpu.memory_space<vmem>>, vector<1x512xf32>
    %cst_22 = arith.constant dense<0.000000e+00> : vector<16x512xf32>
    %36 = tpu.matmul %31, %32, %cst_22 {dimension_numbers = #tpu.dot_dimension_numbers<[1], [0], [0], [1], [0, 0, 1, 1], [], []>} : vector<16x512xf32>, vector<512x512xf32>, vector<16x512xf32> -> vector<16x512xf32>
    %37 = vector.broadcast %33 : vector<1x512xf32> to vector<16x512xf32>
    %38 = arith.addf %36, %37 : vector<16x512xf32>
    %cst_23 = arith.constant dense<0.000000e+00> : vector<16xf32>
    %39 = vector.multi_reduction <add>, %38, %cst_23 [1] : vector<16x512xf32> to vector<16xf32>
    %40 = vector.shape_cast %39 : vector<16xf32> to vector<16x1xf32>
    %cst_24 = arith.constant 5.120000e+02 : f32
    %41 = vector.broadcast %cst_24 : f32 to vector<16x1xf32>
    %42 = arith.divf %40, %41 : vector<16x1xf32>
    %43 = vector.broadcast %42 : vector<16x1xf32> to vector<16x512xf32>
    %44 = arith.subf %38, %43 : vector<16x512xf32>
    %45 = arith.mulf %44, %44 : vector<16x512xf32>
    %cst_25 = arith.constant dense<0.000000e+00> : vector<16xf32>
    %46 = vector.multi_reduction <add>, %45, %cst_25 [1] : vector<16x512xf32> to vector<16xf32>
    %47 = vector.shape_cast %46 : vector<16xf32> to vector<16x1xf32>
    %cst_26 = arith.constant 5.120000e+02 : f32
    %48 = vector.broadcast %cst_26 : f32 to vector<16x1xf32>
    %49 = arith.divf %47, %48 : vector<16x1xf32>
    %cst_27 = arith.constant 9.99999974E-6 : f32
    %50 = vector.broadcast %cst_27 : f32 to vector<16x1xf32>
    %51 = arith.addf %49, %50 : vector<16x1xf32>
    %52 = math.rsqrt %51 : vector<16x1xf32>
    %53 = vector.broadcast %52 : vector<16x1xf32> to vector<16x512xf32>
    %54 = arith.mulf %44, %53 : vector<16x512xf32>
    %55 = vector.broadcast %34 : vector<1x512xf32> to vector<16x512xf32>
    %56 = arith.mulf %54, %55 : vector<16x512xf32>
    %57 = vector.broadcast %35 : vector<1x512xf32> to vector<16x512xf32>
    %58 = arith.addf %56, %57 : vector<16x512xf32>
    %cst_28 = arith.constant 0.000000e+00 : f32
    %59 = vector.broadcast %cst_28 : f32 to vector<16x512xf32>
    %60 = arith.maximumf %58, %59 : vector<16x512xf32>
    %c0_29 = arith.constant 0 : index
    %c0_30 = arith.constant 0 : index
    %61 = vector.load %arg10[%c0_29, %c0_30] : memref<512x512xf32, #tpu.memory_space<vmem>>, vector<512x512xf32>
    %c0_31 = arith.constant 0 : index
    %c0_32 = arith.constant 0 : index
    %62 = vector.load %arg11[%c0_31, %c0_32] : memref<1x512xf32, #tpu.memory_space<vmem>>, vector<1x512xf32>
    %c0_33 = arith.constant 0 : index
    %c0_34 = arith.constant 0 : index
    %63 = vector.load %arg12[%c0_33, %c0_34] : memref<1x512xf32, #tpu.memory_space<vmem>>, vector<1x512xf32>
    %c0_35 = arith.constant 0 : index
    %c0_36 = arith.constant 0 : index
    %64 = vector.load %arg13[%c0_35, %c0_36] : memref<1x512xf32, #tpu.memory_space<vmem>>, vector<1x512xf32>
    %cst_37 = arith.constant dense<0.000000e+00> : vector<16x512xf32>
    %65 = tpu.matmul %60, %61, %cst_37 {dimension_numbers = #tpu.dot_dimension_numbers<[1], [0], [0], [1], [0, 0, 1, 1], [], []>} : vector<16x512xf32>, vector<512x512xf32>, vector<16x512xf32> -> vector<16x512xf32>
    %66 = vector.broadcast %62 : vector<1x512xf32> to vector<16x512xf32>
    %67 = arith.addf %65, %66 : vector<16x512xf32>
    %cst_38 = arith.constant dense<0.000000e+00> : vector<16xf32>
    %68 = vector.multi_reduction <add>, %67, %cst_38 [1] : vector<16x512xf32> to vector<16xf32>
    %69 = vector.shape_cast %68 : vector<16xf32> to vector<16x1xf32>
    %cst_39 = arith.constant 5.120000e+02 : f32
    %70 = vector.broadcast %cst_39 : f32 to vector<16x1xf32>
    %71 = arith.divf %69, %70 : vector<16x1xf32>
    %72 = vector.broadcast %71 : vector<16x1xf32> to vector<16x512xf32>
    %73 = arith.subf %67, %72 : vector<16x512xf32>
    %74 = arith.mulf %73, %73 : vector<16x512xf32>
    %cst_40 = arith.constant dense<0.000000e+00> : vector<16xf32>
    %75 = vector.multi_reduction <add>, %74, %cst_40 [1] : vector<16x512xf32> to vector<16xf32>
    %76 = vector.shape_cast %75 : vector<16xf32> to vector<16x1xf32>
    %cst_41 = arith.constant 5.120000e+02 : f32
    %77 = vector.broadcast %cst_41 : f32 to vector<16x1xf32>
    %78 = arith.divf %76, %77 : vector<16x1xf32>
    %cst_42 = arith.constant 9.99999974E-6 : f32
    %79 = vector.broadcast %cst_42 : f32 to vector<16x1xf32>
    %80 = arith.addf %78, %79 : vector<16x1xf32>
    %81 = math.rsqrt %80 : vector<16x1xf32>
    %82 = vector.broadcast %81 : vector<16x1xf32> to vector<16x512xf32>
    %83 = arith.mulf %73, %82 : vector<16x512xf32>
    %84 = vector.broadcast %63 : vector<1x512xf32> to vector<16x512xf32>
    %85 = arith.mulf %83, %84 : vector<16x512xf32>
    %86 = vector.broadcast %64 : vector<1x512xf32> to vector<16x512xf32>
    %87 = arith.addf %85, %86 : vector<16x512xf32>
    %cst_43 = arith.constant 0.000000e+00 : f32
    %88 = vector.broadcast %cst_43 : f32 to vector<16x512xf32>
    %89 = arith.maximumf %87, %88 : vector<16x512xf32>
    %c0_44 = arith.constant 0 : index
    %c0_45 = arith.constant 0 : index
    %90 = vector.load %arg14[%c0_44, %c0_45] : memref<16x512xf32, #tpu.memory_space<vmem>>, vector<16x512xf32>
    tpu.vector_store %arg14[%c0_44, %c0_45], %89 {strides = array<i32>} : memref<16x512xf32, #tpu.memory_space<vmem>>, vector<16x512xf32>,
    return
  }
  func.func @transform_0(%arg0: i32) -> (i32, i32) {
    %c0_i32 = arith.constant 0 : i32
    %c0_i32_0 = arith.constant 0 : i32
    return %arg0, %c0_i32 : i32, i32
  }
  func.func @transform_1(%arg0: i32) -> (i32, i32) {
    %c0_i32 = arith.constant 0 : i32
    %c0_i32_0 = arith.constant 0 : i32
    %c0_i32_1 = arith.constant 0 : i32
    return %c0_i32, %c0_i32_0 : i32, i32
  }
  func.func @transform_2(%arg0: i32) -> (i32, i32) {
    %c0_i32 = arith.constant 0 : i32
    %c0_i32_0 = arith.constant 0 : i32
    %c0_i32_1 = arith.constant 0 : i32
    return %c0_i32, %c0_i32_0 : i32, i32
  }
  func.func @transform_3(%arg0: i32) -> (i32, i32) {
    %c0_i32 = arith.constant 0 : i32
    %c0_i32_0 = arith.constant 0 : i32
    %c0_i32_1 = arith.constant 0 : i32
    return %c0_i32, %c0_i32_0 : i32, i32
  }
  func.func @transform_4(%arg0: i32) -> (i32, i32) {
    %c0_i32 = arith.constant 0 : i32
    %c0_i32_0 = arith.constant 0 : i32
    %c0_i32_1 = arith.constant 0 : i32
    return %c0_i32, %c0_i32_0 : i32, i32
  }
  func.func @transform_5(%arg0: i32) -> (i32, i32) {
    %c0_i32 = arith.constant 0 : i32
    %c0_i32_0 = arith.constant 0 : i32
    %c0_i32_1 = arith.constant 0 : i32
    return %c0_i32, %c0_i32_0 : i32, i32
  }
  func.func @transform_6(%arg0: i32) -> (i32, i32) {
    %c0_i32 = arith.constant 0 : i32
    %c0_i32_0 = arith.constant 0 : i32
    %c0_i32_1 = arith.constant 0 : i32
    return %c0_i32, %c0_i32_0 : i32, i32
  }
  func.func @transform_7(%arg0: i32) -> (i32, i32) {
    %c0_i32 = arith.constant 0 : i32
    %c0_i32_0 = arith.constant 0 : i32
    %c0_i32_1 = arith.constant 0 : i32
    return %c0_i32, %c0_i32_0 : i32, i32
  }
  func.func @transform_8(%arg0: i32) -> (i32, i32) {
    %c0_i32 = arith.constant 0 : i32
    %c0_i32_0 = arith.constant 0 : i32
    %c0_i32_1 = arith.constant 0 : i32
    return %c0_i32, %c0_i32_0 : i32, i32
  }
  func.func @transform_9(%arg0: i32) -> (i32, i32) {
    %c0_i32 = arith.constant 0 : i32
    %c0_i32_0 = arith.constant 0 : i32
    %c0_i32_1 = arith.constant 0 : i32
    return %c0_i32, %c0_i32_0 : i32, i32
  }
  func.func @transform_10(%arg0: i32) -> (i32, i32) {
    %c0_i32 = arith.constant 0 : i32
    %c0_i32_0 = arith.constant 0 : i32
    %c0_i32_1 = arith.constant 0 : i32
    return %c0_i32, %c0_i32_0 : i32, i32
  }
  func.func @transform_11(%arg0: i32) -> (i32, i32) {
    %c0_i32 = arith.constant 0 : i32
    %c0_i32_0 = arith.constant 0 : i32
    %c0_i32_1 = arith.constant 0 : i32
    return %c0_i32, %c0_i32_0 : i32, i32
  }
  func.func @transform_12(%arg0: i32) -> (i32, i32) {
    %c0_i32 = arith.constant 0 : i32
    %c0_i32_0 = arith.constant 0 : i32
    %c0_i32_1 = arith.constant 0 : i32
    return %c0_i32, %c0_i32_0 : i32, i32
  }
  func.func @transform_13(%arg0: i32) -> (i32, i32) {
    %c0_i32 = arith.constant 0 : i32
    %c0_i32_0 = arith.constant 0 : i32
    return %arg0, %c0_i32 : i32, i32
  }
}

</mosaic_0001>

<bundles_post_ra>
// kernel: decoder_mlp_forward_jit.1
= control target key start
LH: loop header
LB: loop body
LE: loop exit
PB: predicated region body
PF: predicated region fallthrough
CT: control target
= control target key end

     0   :  { %18 = vsyncpa [#allocation3], 0  ;;  %s2728_s0 = inlined_call_operand.vmem [shape: f32[16,1], index: 0, kind: input, shape index: {}]   ;;  %s2729_s1 = inlined_call_operand.vmem [shape: f32[1,512], index: 1, kind: input, shape index: {}]   ;;  %s2730_s2 = inlined_call_operand.vmem [shape: f32[1,512], index: 2, kind: input, shape index: {}]   ;;  %s2731_s3 = inlined_call_operand.vmem [shape: f32[1,512], index: 3, kind: input, shape index: {}]   ;;  %s2732_s4 = inlined_call_operand.vmem [shape: f32[1,512], index: 4, kind: input, shape index: {}]   ;;  %s2733_s5 = inlined_call_operand.hbm [shape: f32[512,512], index: 5, kind: input, shape index: {}]   ;;  %s2734_s6 = inlined_call_operand.vmem [shape: f32[1,512], index: 6, kind: input, shape index: {}]   ;;  %s2735_s7 = inlined_call_operand.vmem [shape: f32[1,512], index: 7, kind: input, shape index: {}]   ;;  %s2736_s8 = inlined_call_operand.vmem [shape: f32[1,512], index: 8, kind: input, shape index: {}]   ;;  %s2737_s9 = inlined_call_operand.hbm [shape: f32[512,512], index: 9, kind: input, shape index: {}]   ;;  %s2738_s10 = inlined_call_operand.vmem [shape: f32[1,512], index: 10, kind: input, shape index: {}]   ;;  %s2739_s11 = inlined_call_operand.vmem [shape: f32[1,512], index: 11, kind: input, shape index: {}]   ;;  %s2740_s12 = inlined_call_operand.vmem [shape: f32[1,512], index: 12, kind: input, shape index: {}]   ;;  %s2741_s13 = inlined_call_operand.hbm [shape: f32[16,512], index: 13, kind: output, shape index: {}]  }
   0x1   :  { %19 = vsyncpa [#allocation6], 0 }
   0x2   :  { %20 = vsyncpa [#allocation4], 0  ;;  %s2339_s25 = smov [#allocation2]   ;;  %s2267_s29 = scalar_lea.hbm %s2733_s5, 32768 }
   0x3   :  { %s36_s26 = sshll.u32 %s2339_s25, 4  ;;  %p2268_p0 = scmp.ne.s32.totalorder %s2733_s5, %s2267_s29  ;;  %s37_s26 = int_to_ptr.vmem [resolvable:$true] %s36_s26 }
   0x4   :  { %p2271_p1 = scmp.lt.u32.totalorder %s2267_s29, %s2733_s5 }
   0x6   :  { %p2273_p2 = pnand %p2271_p1, %p2268_p0 }
   0x8   :  { %2276 = shalt.err (!%p2273_p2)
}
   0x9   :  { %s2277_s17 = scalar_lea.vmem %s37_s26, 32768  ;;  %p2282_p4 = scmp.lt.s32.totalorder %s37_s26, %s37_s26 }
   0xa   :  { %p2278_p3 = scmp.ne.s32.totalorder %s37_s26, %s2277_s17  ;;  %p2283_p5 = scmp.lt.s32.totalorder %s2277_s17, %s2277_s17 }
   0xc   :  { %p2284_p6 = por %p2283_p5, %p2282_p4 }
   0xe   :  { %p2285_p7 = pnand %p2284_p6, %p2278_p3 }
  0x10   :  { %2288 = shalt.err (!%p2285_p7)
}
  0x11   :  { %s2340_s18 = smov 512   ;;  %s2341_s19 = smov 32  }
  0x12   :  { %42 = dma.hbm_to_vmem [thread:$0]  %s2733_s5, 32768, %s37_s26, [#allocation3], %s2340_s18, %s2340_s18, %s2341_s19  }
  0x13   :  { %s2342_s22 = smov [#allocation5]   ;;  %s2289_s27 = scalar_lea.hbm %s2737_s9, 32768 }
  0x14   :  { %s54_s23 = sshll.u32 %s2342_s22, 4  ;;  %p2290_p8 = scmp.ne.s32.totalorder %s2737_s9, %s2289_s27  ;;  %s55_s23 = int_to_ptr.vmem [resolvable:$true] %s54_s23 }
  0x15   :  { %p2293_p9 = scmp.lt.u32.totalorder %s2289_s27, %s2737_s9 }
  0x17   :  { %p2295_p10 = pnand %p2293_p9, %p2290_p8 }
  0x19   :  { %2298 = shalt.err (!%p2295_p10)
}
  0x1a   :  { %s2299_s15 = scalar_lea.vmem %s55_s23, 32768  ;;  %p2304_p12 = scmp.lt.s32.totalorder %s55_s23, %s55_s23 }
  0x1b   :  { %p2300_p11 = scmp.ne.s32.totalorder %s55_s23, %s2299_s15  ;;  %p2305_p13 = scmp.lt.s32.totalorder %s2299_s15, %s2299_s15 }
  0x1d   :  { %p2306_p0 = por %p2305_p13, %p2304_p12 }
  0x1f   :  { %p2307_p1 = pnand %p2306_p0, %p2300_p11 }
  0x21   :  { %2310 = shalt.err (!%p2307_p1)
}
  0x22   :  { %60 = dma.hbm_to_vmem [thread:$0]  %s2737_s9, 32768, %s55_s23, [#allocation6], %s2340_s18, %s2340_s18, %s2341_s19  }
  0x23   :  { %2333 = dma.done.wait [#allocation3], 32768  }
  0x24   :  { %2334 = vsyncadd [#allocation3], 4294934528 }
  0x25   :  { %2335 = dma.done.wait [#allocation6], 32768  }
  0x26   :  { %2336 = vsyncadd [#allocation6], 4294934528  ;;  %v2343_v0 = vmov 0   ;;  %v73_v1 = vld [vmem:[%s2728_s0] sm:$0xff]  ;;  %v74_v2 = vld [vmem:[%s2728_s0 + $0x8] sm:$0xff]  ;;  %v90_v3 = vlaneseq }
  0x27   :  { %2254 = vset.pattern.permute.xlu0 %v2343_v0  ;;  %v75_v8 = vld [vmem:[%s2729_s1] sm:$0xf]  ;;  %v267_v43 = vld [vmem:[#allocation2 + $0x8] sm:$0xff]  ;;  %v269_v45 = vld [vmem:[#allocation2 + $0x18] sm:$0xff] }
  0x28   :  { %81 = vperm.xlu0 %2254, %v73_v1   ;;  %v91_v4 = vshrl.u32 %v90_v3, 7  ;;  %v76_v10 = vld [vmem:[%s2730_s2] sm:$0xf]  ;;  %v271_v44 = vld [vmem:[#allocation2 + $0x28] sm:$0xff]  ;;  %v273_v47 = vld [vmem:[#allocation2 + $0x38] sm:$0xff] }
  0x29   :  { %v1704_v46 = vpack.c.bf16 %v271_v44, %v267_v43  ;;  %v266_v48 = vld [vmem:[#allocation2] sm:$0xff]  ;;  %v1832_v50 = vpack.c.bf16 %v273_v47, %v269_v45  ;;  %v268_v52 = vld [vmem:[#allocation2 + $0x10] sm:$0xff]  ;;  %v275_v54 = vld [vmem:[#allocation2 + $0x48] sm:$0xff] }
  0x2a   :  { %v2451_v5 = vsub.s32 0, %v91_v4  ;;  %v2453_v6 = vsub.s32 1, %v91_v4  ;;  %v2455_v7 = vsub.s32 2, %v91_v4  ;;  %v2460_v9 = vsub.s32 3, %v91_v4  ;;  %v270_v49 = vld [vmem:[#allocation2 + $0x20] sm:$0xff]  ;;  %v272_v53 = vld [vmem:[#allocation2 + $0x30] sm:$0xff] }
  0x2b   :  { %v1706_v51 = vpack.c.bf16 %v270_v49, %v266_v48  ;;  %1705 = vmatprep.subr.bf16.mxu0 %v1704_v46  ;;  %v1834_v55 = vpack.c.bf16 %v272_v53, %v268_v52  ;;  %v279_v56 = vld [vmem:[#allocation2 + $0x68] sm:$0xff]  ;;  %v277_v57 = vld [vmem:[#allocation2 + $0x58] sm:$0xff]  ;;  %1833 = vmatprep.subr.bf16.mxu1 %v1832_v50  ;;  %v274_v61 = vld [vmem:[#allocation2 + $0x40] sm:$0xff] }
  0x2c   :  { %86 = vperm.xlu0 %2254, %v74_v2   ;;  %v93_v11 = vrot.slane %v75_v8, %v2451_v5  ;;  %v97_v12 = vrot.slane %v75_v8, %v2453_v6  ;;  %v101_v13 = vrot.slane %v75_v8, %v2455_v7  ;;  %v105_v14 = vrot.slane %v75_v8, %v2460_v9  ;;  %v281_v58 = vld [vmem:[#allocation2 + $0x78] sm:$0xff]  ;;  %v278_v62 = vld [vmem:[#allocation2 + $0x60] sm:$0xff]  ;;  %v276_v63 = vld [vmem:[#allocation2 + $0x50] sm:$0xff] }
  0x2d   :  { %v122_v15 = vrot.slane %v76_v10, %v2451_v5  ;;  %v126_v16 = vrot.slane %v76_v10, %v2453_v6  ;;  %v130_v18 = vrot.slane %v76_v10, %v2455_v7  ;;  %v134_v23 = vrot.slane %v76_v10, %v2460_v9  ;;  %1707 = vmatpush1.bf16.msra.mxu0 %v1706_v51  ;;  %v280_v1 = vld [vmem:[#allocation2 + $0x70] sm:$0xff]  ;;  %v283_v2 = vld [vmem:[#allocation2 + $0x88] sm:$0xff]  ;;  %v285_v10 = vld [vmem:[#allocation2 + $0x98] sm:$0xff] }
  0x2e   :  { %v1708_v59 = vpack.c.bf16 %v279_v56, %v275_v54  ;;  %v1836_v60 = vpack.c.bf16 %v281_v58, %v277_v57  ;;  %1835 = vmatpush1.bf16.msra.mxu1 %v1834_v55  ;;  %v1710_v0 = vpack.c.bf16 %v278_v62, %v274_v61  ;;  %v287_v3 = vld [vmem:[#allocation2 + $0xa8] sm:$0xff]  ;;  %v1838_v4 = vpack.c.bf16 %v280_v1, %v276_v63  ;;  %v298_v44 = vld [vmem:[#allocation2 + $0x100] sm:$0xff]  ;;  %v300_v46 = vld [vmem:[#allocation2 + $0x110] sm:$0xff] }
  0x2f   :  { %v1712_v8 = vpack.c.bf16 %v287_v3, %v283_v2  ;;  %v302_v45 = vld [vmem:[#allocation2 + $0x120] sm:$0xff]  ;;  %v304_v48 = vld [vmem:[#allocation2 + $0x130] sm:$0xff]  ;;  %v307_v49 = vld [vmem:[#allocation2 + $0x148] sm:$0xff] }
  0x30   :  { %1709 = vmatprep.subr.bf16.mxu0 %v1708_v59  ;;  %1837 = vmatprep.subr.bf16.mxu1 %v1836_v60  ;;  %v311_v50 = vld [vmem:[#allocation2 + $0x168] sm:$0xff]  ;;  %v309_v51 = vld [vmem:[#allocation2 + $0x158] sm:$0xff]  ;;  %v1722_v53 = vpack.c.bf16 %v302_v45, %v298_v44  ;;  %v1850_v54 = vpack.c.bf16 %v304_v48, %v300_v46  ;;  %v306_v56 = vld [vmem:[#allocation2 + $0x140] sm:$0xff] }
  0x31   :  { %1711 = vmatpush1.bf16.msra.mxu0 %v1710_v0  ;;  %v313_v52 = vld [vmem:[#allocation2 + $0x178] sm:$0xff]  ;;  %v1724_v55 = vpack.c.bf16 %v311_v50, %v307_v49  ;;  %v310_v57 = vld [vmem:[#allocation2 + $0x160] sm:$0xff]  ;;  %v308_v58 = vld [vmem:[#allocation2 + $0x150] sm:$0xff] }
  0x32   :  { %1839 = vmatpush1.bf16.msra.mxu1 %v1838_v4  ;;  %1713 = vmatprep.subr.bf16.mxu0 %v1712_v8  ;;  %v1852_v59 = vpack.c.bf16 %v313_v52, %v309_v51  ;;  %v312_v60 = vld [vmem:[#allocation2 + $0x170] sm:$0xff]  ;;  %v315_v61 = vld [vmem:[#allocation2 + $0x188] sm:$0xff]  ;;  %v317_v63 = vld [vmem:[#allocation2 + $0x198] sm:$0xff]  ;;  %v1726_v1 = vpack.c.bf16 %v310_v57, %v306_v56 }
  0x33   :  { %v319_v62 = vld [vmem:[#allocation2 + $0x1a8] sm:$0xff]  ;;  %v321_v0 = vld [vmem:[#allocation2 + $0x1b8] sm:$0xff]  ;;  %v1854_v2 = vpack.c.bf16 %v312_v60, %v308_v58  ;;  %v314_v4 = vld [vmem:[#allocation2 + $0x180] sm:$0xff] }
  0x34   :  { %v1728_v3 = vpack.c.bf16 %v319_v62, %v315_v61  ;;  %v318_v8 = vld [vmem:[#allocation2 + $0x1a0] sm:$0xff]  ;;  %v336_v44 = vld [vmem:[#allocation2 + $0x230] sm:$0xff]  ;;  %v339_v45 = vld [vmem:[#allocation2 + $0x248] sm:$0xff] }
  0x35   :  { %v343_v46 = vld [vmem:[#allocation2 + $0x268] sm:$0xff]  ;;  %v345_v48 = vld [vmem:[#allocation2 + $0x278] sm:$0xff]  ;;  %v338_v52 = vld [vmem:[#allocation2 + $0x240] sm:$0xff] }
  0x36   :  { %v1740_v51 = vpack.c.bf16 %v343_v46, %v339_v45  ;;  %v344_v56 = vld [vmem:[#allocation2 + $0x270] sm:$0xff]  ;;  %v347_v57 = vld [vmem:[#allocation2 + $0x288] sm:$0xff]  ;;  %v353_v60 = vld [vmem:[#allocation2 + $0x2b8] sm:$0xff] }
  0x37   :  { %v351_v58 = vld [vmem:[#allocation2 + $0x2a8] sm:$0xff]  ;;  %v356_v46 = vld [vmem:[#allocation2 + $0x2d0] sm:$0xff] }
  0xa7   :  { %v82_v17 = vpop.permute.xlu0 %81 }
  0xa8   :  { %v110_v19 = vmul.f32 %v93_v11, %v82_v17  ;;  %v111_v20 = vmul.f32 %v97_v12, %v82_v17  ;;  %v112_v21 = vmul.f32 %v101_v13, %v82_v17  ;;  %v113_v22 = vmul.f32 %v105_v14, %v82_v17 }
  0xaa   :  { %v2473_v24 = vadd.f32 %v122_v15, %v110_v19  ;;  %v2475_v25 = vadd.f32 %v126_v16, %v111_v20  ;;  %v2477_v27 = vadd.f32 %v130_v18, %v112_v21  ;;  %v2481_v32 = vadd.f32 %v134_v23, %v113_v22  ;;  %v295_v19 = vld [vmem:[#allocation2 + $0xe8] sm:$0xff]  ;;  %v293_v20 = vld [vmem:[#allocation2 + $0xd8] sm:$0xff] }
  0xab   :  { %v87_v26 = vpop.permute.xlu0 %86 }
  0xac   :  { %v114_v28 = vmul.f32 %v93_v11, %v87_v26  ;;  %v115_v29 = vmul.f32 %v97_v12, %v87_v26  ;;  %v116_v30 = vmul.f32 %v101_v13, %v87_v26  ;;  %v147_v31 = vadd.f32 %v2475_v25, %v2473_v24  ;;  %v289_v11 = vld [vmem:[#allocation2 + $0xb8] sm:$0xff]  ;;  %v282_v12 = vld [vmem:[#allocation2 + $0x80] sm:$0xff] }
  0xad   :  { %v117_v34 = vmul.f32 %v105_v14, %v87_v26  ;;  %v1840_v13 = vpack.c.bf16 %v289_v11, %v285_v10  ;;  %v286_v14 = vld [vmem:[#allocation2 + $0xa0] sm:$0xff]  ;;  %v316_v10 = vld [vmem:[#allocation2 + $0x190] sm:$0xff]  ;;  %v1856_v11 = vpack.c.bf16 %v321_v0, %v317_v63  ;;  %v1744_v63 = vpack.c.bf16 %v351_v58, %v347_v57 }
  0xae   :  { %v148_v33 = vadd.f32 %v147_v31, %v2477_v27  ;;  %v2484_v35 = vadd.f32 %v122_v15, %v114_v28  ;;  %v2486_v36 = vadd.f32 %v126_v16, %v115_v29  ;;  %v2489_v38 = vadd.f32 %v130_v18, %v116_v30  ;;  %v284_v15 = vld [vmem:[#allocation2 + $0x90] sm:$0xff]  ;;  %v291_v18 = vld [vmem:[#allocation2 + $0xc8] sm:$0xff]  ;;  %v290_v26 = vld [vmem:[#allocation2 + $0xc0] sm:$0xff] }
  0xaf   :  { %v2493_v40 = vadd.f32 %v134_v23, %v117_v34  ;;  %v288_v16 = vld [vmem:[#allocation2 + $0xb0] sm:$0xff]  ;;  %v1714_v17 = vpack.c.bf16 %v286_v14, %v282_v12  ;;  %v1716_v22 = vpack.c.bf16 %v295_v19, %v291_v18  ;;  %v297_v23 = vld [vmem:[#allocation2 + $0xf8] sm:$0xff]  ;;  %v294_v28 = vld [vmem:[#allocation2 + $0xe0] sm:$0xff]  ;;  %1841 = vmatprep.subr.bf16.mxu1 %v1840_v13 }
  0xb0   :  { %v149_v37 = vadd.f32 %v148_v33, %v2481_v32  ;;  %v152_v39 = vadd.f32 %v2486_v36, %v2484_v35  ;;  %v1842_v21 = vpack.c.bf16 %v288_v16, %v284_v15  ;;  %v1844_v29 = vpack.c.bf16 %v297_v23, %v293_v20  ;;  %v292_v30 = vld [vmem:[#allocation2 + $0xd0] sm:$0xff]  ;;  %v299_v33 = vld [vmem:[#allocation2 + $0x108] sm:$0xff]  ;;  %v325_v15 = vld [vmem:[#allocation2 + $0x1d8] sm:$0xff] }
  0xb1   :  { %v296_v31 = vld [vmem:[#allocation2 + $0xf0] sm:$0xff]  ;;  %v303_v34 = vld [vmem:[#allocation2 + $0x128] sm:$0xff]  ;;  %1715 = vmatpush1.bf16.msra.mxu0 %v1714_v17  ;;  %v329_v16 = vld [vmem:[#allocation2 + $0x1f8] sm:$0xff]  ;;  %v1730_v17 = vpack.c.bf16 %v318_v8, %v314_v4 }
  0xb2   :  { %150 = vadd.xlane.f32.xlu1 %v149_v37  ;;  %v153_v41 = vadd.f32 %v152_v39, %v2489_v38  ;;  %v301_v37 = vld [vmem:[#allocation2 + $0x118] sm:$0xff]  ;;  %1843 = vmatpush1.bf16.msra.mxu1 %v1842_v21  ;;  %v1720_v43 = vpack.c.bf16 %v303_v34, %v299_v33  ;;  %v320_v12 = vld [vmem:[#allocation2 + $0x1b0] sm:$0xff]  ;;  %v323_v13 = vld [vmem:[#allocation2 + $0x1c8] sm:$0xff]  ;;  %v1860_v23 = vpack.c.bf16 %v329_v16, %v325_v15 }
  0xb3   :  { %v305_v39 = vld [vmem:[#allocation2 + $0x138] sm:$0xff]  ;;  %1717 = vmatprep.subr.bf16.mxu0 %v1716_v22  ;;  %1845 = vmatprep.subr.bf16.mxu1 %v1844_v29  ;;  %v327_v14 = vld [vmem:[#allocation2 + $0x1e8] sm:$0xff]  ;;  %v1858_v18 = vpack.c.bf16 %v320_v12, %v316_v10  ;;  %v322_v20 = vld [vmem:[#allocation2 + $0x1c0] sm:$0xff] }
  0xb4   :  { %v154_v42 = vadd.f32 %v153_v41, %v2493_v40  ;;  %v1718_v41 = vpack.c.bf16 %v294_v28, %v290_v26  ;;  %v1848_v47 = vpack.c.bf16 %v305_v39, %v301_v37  ;;  %v1732_v19 = vpack.c.bf16 %v327_v14, %v323_v13  ;;  %v326_v21 = vld [vmem:[#allocation2 + $0x1e0] sm:$0xff]  ;;  %v324_v22 = vld [vmem:[#allocation2 + $0x1d0] sm:$0xff]  ;;  %v331_v28 = vld [vmem:[#allocation2 + $0x208] sm:$0xff] }
  0xb5   :  { %v328_v26 = vld [vmem:[#allocation2 + $0x1f0] sm:$0xff]  ;;  %v335_v29 = vld [vmem:[#allocation2 + $0x228] sm:$0xff]  ;;  %v1734_v33 = vpack.c.bf16 %v326_v21, %v322_v20  ;;  %v330_v39 = vld [vmem:[#allocation2 + $0x200] sm:$0xff] }
  0xb6   :  { %155 = vadd.xlane.f32.xlu1 %v154_v42  ;;  %v1846_v42 = vpack.c.bf16 %v296_v31, %v292_v30  ;;  %1719 = vmatpush1.bf16.msra.mxu0 %v1718_v41  ;;  %v333_v30 = vld [vmem:[#allocation2 + $0x218] sm:$0xff]  ;;  %v1862_v34 = vpack.c.bf16 %v328_v26, %v324_v22  ;;  %v1736_v37 = vpack.c.bf16 %v335_v29, %v331_v28  ;;  %v334_v41 = vld [vmem:[#allocation2 + $0x220] sm:$0xff]  ;;  %v348_v28 = vld [vmem:[#allocation2 + $0x290] sm:$0xff] }
  0xb7   :  { %1721 = vmatprep.subr.bf16.mxu0 %v1720_v43  ;;  %v337_v31 = vld [vmem:[#allocation2 + $0x238] sm:$0xff]  ;;  %v1738_v49 = vpack.c.bf16 %v334_v41, %v330_v39  ;;  %v350_v26 = vld [vmem:[#allocation2 + $0x2a0] sm:$0xff]  ;;  %v364_v58 = vld [vmem:[#allocation2 + $0x310] sm:$0xff] }
  0xb8   :  { %1847 = vmatpush1.bf16.msra.mxu1 %v1846_v42  ;;  %v332_v42 = vld [vmem:[#allocation2 + $0x210] sm:$0xff]  ;;  %v1864_v43 = vpack.c.bf16 %v337_v31, %v333_v30  ;;  %v361_v41 = vld [vmem:[#allocation2 + $0x2f8] sm:$0xff] }
  0xb9   :  { %1849 = vmatprep.subr.bf16.mxu1 %v1848_v47  ;;  %v341_v47 = vld [vmem:[#allocation2 + $0x258] sm:$0xff]  ;;  %v1866_v50 = vpack.c.bf16 %v336_v44, %v332_v42  ;;  %v352_v30 = vld [vmem:[#allocation2 + $0x2b0] sm:$0xff]  ;;  %v354_v42 = vld [vmem:[#allocation2 + $0x2c0] sm:$0xff] }
  0xba   :  { %1723 = vmatpush1.bf16.msra.mxu0 %v1722_v53  ;;  %v342_v53 = vld [vmem:[#allocation2 + $0x260] sm:$0xff]  ;;  %v1874_v31 = vpack.c.bf16 %v352_v30, %v348_v28  ;;  %v391_v28 = vld [vmem:[#allocation2 + $0x3e8] sm:$0xff] }
  0xbb   :  { %1725 = vmatprep.subr.bf16.mxu0 %v1724_v55  ;;  %v1868_v55 = vpack.c.bf16 %v345_v48, %v341_v47  ;;  %v1742_v61 = vpack.c.bf16 %v342_v53, %v338_v52  ;;  %v360_v47 = vld [vmem:[#allocation2 + $0x2f0] sm:$0xff]  ;;  %v369_v53 = vld [vmem:[#allocation2 + $0x338] sm:$0xff] }
  0xbc   :  { %1851 = vmatpush1.bf16.msra.mxu1 %v1850_v54  ;;  %v340_v54 = vld [vmem:[#allocation2 + $0x250] sm:$0xff]  ;;  %v1878_v48 = vpack.c.bf16 %v360_v47, %v356_v46  ;;  %v399_v46 = vld [vmem:[#allocation2 + $0x428] sm:$0xff]  ;;  %v397_v47 = vld [vmem:[#allocation2 + $0x418] sm:$0xff] }
  0xbd   :  { %1853 = vmatprep.subr.bf16.mxu1 %v1852_v59  ;;  %v349_v59 = vld [vmem:[#allocation2 + $0x298] sm:$0xff]  ;;  %v1870_v62 = vpack.c.bf16 %v344_v56, %v340_v54  ;;  %v362_v54 = vld [vmem:[#allocation2 + $0x300] sm:$0xff] }
  0xbe   :  { %1727 = vmatpush1.bf16.msra.mxu0 %v1726_v1  ;;  %v1872_v0 = vpack.c.bf16 %v353_v60, %v349_v59  ;;  %v368_v59 = vld [vmem:[#allocation2 + $0x330] sm:$0xff] }
  0xbf   :  { %1729 = vmatprep.subr.bf16.mxu0 %v1728_v3  ;;  %v1882_v60 = vpack.c.bf16 %v368_v59, %v364_v58  ;;  %v78_v58 = vld [vmem:[%s2732_s4] sm:$0xf] }
  0xc0   :  { %1855 = vmatpush1.bf16.msra.mxu1 %v1854_v2 }
  0xc1   :  { %1857 = vmatprep.subr.bf16.mxu1 %v1856_v11 }
  0xc2   :  { %1731 = vmatpush1.bf16.msra.mxu0 %v1730_v17 }
  0xc3   :  { %1733 = vmatprep.subr.bf16.mxu0 %v1732_v19 }
  0xc4   :  { %1859 = vmatpush1.bf16.msra.mxu1 %v1858_v18 }
  0xc5   :  { %1861 = vmatprep.subr.bf16.mxu1 %v1860_v23 }
  0xc6   :  { %1735 = vmatpush1.bf16.msra.mxu0 %v1734_v33  ;;  %v355_v33 = vld [vmem:[#allocation2 + $0x2c8] sm:$0xff] }
  0xc7   :  { %1737 = vmatprep.subr.bf16.mxu0 %v1736_v37  ;;  %v357_v37 = vld [vmem:[#allocation2 + $0x2d8] sm:$0xff] }
  0xc8   :  { %1863 = vmatpush1.bf16.msra.mxu1 %v1862_v34  ;;  %v359_v34 = vld [vmem:[#allocation2 + $0x2e8] sm:$0xff]  ;;  %v1876_v44 = vpack.c.bf16 %v361_v41, %v357_v37  ;;  %v388_v41 = vld [vmem:[#allocation2 + $0x3d0] sm:$0xff] }
  0xc9   :  { %1865 = vmatprep.subr.bf16.mxu1 %v1864_v43  ;;  %v1748_v39 = vpack.c.bf16 %v359_v34, %v355_v33  ;;  %v358_v43 = vld [vmem:[#allocation2 + $0x2e0] sm:$0xff]  ;;  %v393_v33 = vld [vmem:[#allocation2 + $0x3f8] sm:$0xff] }
  0xca   :  { %1739 = vmatpush1.bf16.msra.mxu0 %v1738_v49  ;;  %v1750_v45 = vpack.c.bf16 %v358_v43, %v354_v42  ;;  %v363_v49 = vld [vmem:[#allocation2 + $0x308] sm:$0xff]  ;;  %v386_v34 = vld [vmem:[#allocation2 + $0x3c0] sm:$0xff]  ;;  %v392_v42 = vld [vmem:[#allocation2 + $0x3f0] sm:$0xff] }
  0xcb   :  { %1741 = vmatprep.subr.bf16.mxu0 %v1740_v51  ;;  %v365_v51 = vld [vmem:[#allocation2 + $0x318] sm:$0xff] }
  0xcc   :  { %1867 = vmatpush1.bf16.msra.mxu1 %v1866_v50  ;;  %v367_v50 = vld [vmem:[#allocation2 + $0x328] sm:$0xff]  ;;  %v1880_v56 = vpack.c.bf16 %v369_v53, %v365_v51 }
  0xcd   :  { %1869 = vmatprep.subr.bf16.mxu1 %v1868_v55  ;;  %v1752_v52 = vpack.c.bf16 %v367_v50, %v363_v49  ;;  %v366_v55 = vld [vmem:[#allocation2 + $0x320] sm:$0xff]  ;;  %v401_v49 = vld [vmem:[#allocation2 + $0x438] sm:$0xff] }
  0xce   :  { %1743 = vmatpush1.bf16.msra.mxu0 %v1742_v61  ;;  %v1754_v57 = vpack.c.bf16 %v366_v55, %v362_v54  ;;  %v371_v61 = vld [vmem:[#allocation2 + $0x348] sm:$0xff]  ;;  %v1896_v50 = vpack.c.bf16 %v401_v49, %v397_v47 }
  0xcf   :  { %1745 = vmatprep.subr.bf16.mxu0 %v1744_v63  ;;  %v373_v63 = vld [vmem:[#allocation2 + $0x358] sm:$0xff]  ;;  %v415_v49 = vld [vmem:[#allocation2 + $0x4a8] sm:$0xff] }
  0xd0   :  { %1871 = vmatpush1.bf16.msra.mxu1 %v1870_v62  ;;  %v375_v62 = vld [vmem:[#allocation2 + $0x368] sm:$0xff] }
  0xd1   :  { %1873 = vmatprep.subr.bf16.mxu1 %v1872_v0  ;;  %v1756_v0 = vpack.c.bf16 %v375_v62, %v371_v61 }
  0xd4   :  { %1875 = vmatpush1.bf16.msra.mxu1 %v1874_v31  ;;  %v389_v31 = vld [vmem:[#allocation2 + $0x3d8] sm:$0xff] }
  0xd5   :  { %1877 = vmatprep.subr.bf16.mxu1 %v1876_v44  ;;  %v1892_v37 = vpack.c.bf16 %v393_v33, %v389_v31  ;;  %v1894_v44 = vpack.c.bf16 %v392_v42, %v388_v41  ;;  %v402_v41 = vld [vmem:[#allocation2 + $0x440] sm:$0xff] }
  0xd8   :  { %1879 = vmatpush1.bf16.msra.mxu1 %v1878_v48 }
  0xd9   :  { %1881 = vmatprep.subr.bf16.mxu1 %v1880_v56 }
  0xdc   :  { %1883 = vmatpush1.bf16.msra.mxu1 %v1882_v60 }
 0x13f   :  { %v151_v1 = vpop.xlane.xlu1 %150 }
 0x140   :  { %v158_v2 = vmul.f32 0.001953125, %v151_v1  ;;  %v377_v1 = vld [vmem:[#allocation2 + $0x378] sm:$0xff] }
 0x142   :  { %v2498_v3 = vsub.f32 %v2473_v24, %v158_v2  ;;  %v2501_v4 = vsub.f32 %v2475_v25, %v158_v2  ;;  %v2504_v8 = vsub.f32 %v2477_v27, %v158_v2  ;;  %v2507_v11 = vsub.f32 %v2481_v32, %v158_v2  ;;  %v370_v2 = vld [vmem:[#allocation2 + $0x340] sm:$0xff] }
 0x143   :  { %v156_v10 = vpop.xlane.xlu1 %155 }
 0x144   :  { %v159_v12 = vmul.f32 0.001953125, %v156_v10  ;;  %v168_v13 = vmul.f32 %v2498_v3, %v2498_v3  ;;  %v169_v14 = vmul.f32 %v2501_v4, %v2501_v4  ;;  %v170_v24 = vmul.f32 %v2504_v8, %v2504_v8  ;;  %v374_v10 = vld [vmem:[#allocation2 + $0x360] sm:$0xff] }
 0x145   :  { %v171_v16 = vmul.f32 %v2507_v11, %v2507_v11 }
 0x146   :  { %v2516_v25 = vsub.f32 %v2484_v35, %v159_v12  ;;  %v2519_v27 = vsub.f32 %v2486_v36, %v159_v12  ;;  %v176_v15 = vadd.f32 %v169_v14, %v168_v13  ;;  %v2522_v32 = vsub.f32 %v2489_v38, %v159_v12  ;;  %v372_v14 = vld [vmem:[#allocation2 + $0x350] sm:$0xff] }
 0x147   :  { %v2527_v18 = vsub.f32 %v2493_v40, %v159_v12  ;;  %v346_v40 = vld [vmem:[#allocation2 + $0x280] sm:$0xff]  ;;  %v1884_v12 = vpack.c.bf16 %v377_v1, %v373_v63  ;;  %v1758_v13 = vpack.c.bf16 %v374_v10, %v370_v2  ;;  %v237_v63 = vrot.slane %v78_v58, %v2453_v6 }
 0x148   :  { %v177_v17 = vadd.f32 %v176_v15, %v170_v24  ;;  %v172_v19 = vmul.f32 %v2516_v25, %v2516_v25  ;;  %v173_v35 = vmul.f32 %v2519_v27, %v2519_v27  ;;  %v174_v36 = vmul.f32 %v2522_v32, %v2522_v32  ;;  %v376_v24 = vld [vmem:[#allocation2 + $0x370] sm:$0xff]  ;;  %v379_v15 = vld [vmem:[#allocation2 + $0x388] sm:$0xff]  ;;  %v394_v10 = vld [vmem:[#allocation2 + $0x400] sm:$0xff] }
 0x149   :  { %v175_v38 = vmul.f32 %v2527_v18, %v2527_v18  ;;  %v1746_v29 = vpack.c.bf16 %v350_v26, %v346_v40  ;;  %1885 = vmatprep.subr.bf16.mxu1 %v1884_v12  ;;  %v384_v40 = vld [vmem:[#allocation2 + $0x3b0] sm:$0xff]  ;;  %v387_v26 = vld [vmem:[#allocation2 + $0x3c8] sm:$0xff]  ;;  %v233_v2 = vrot.slane %v78_v58, %v2451_v5  ;;  %v398_v12 = vld [vmem:[#allocation2 + $0x420] sm:$0xff] }
 0x14a   :  { %v178_v20 = vadd.f32 %v177_v17, %v171_v16  ;;  %v181_v21 = vadd.f32 %v173_v35, %v172_v19  ;;  %v1886_v16 = vpack.c.bf16 %v376_v24, %v372_v14  ;;  %v383_v17 = vld [vmem:[#allocation2 + $0x3a8] sm:$0xff]  ;;  %v381_v19 = vld [vmem:[#allocation2 + $0x398] sm:$0xff]  ;;  %v1764_v30 = vpack.c.bf16 %v391_v28, %v387_v26 }
 0x14b   :  { %1747 = vmatpush1.bf16.msra.mxu0 %v1746_v29  ;;  %v385_v35 = vld [vmem:[#allocation2 + $0x3b8] sm:$0xff]  ;;  %v241_v14 = vrot.slane %v78_v58, %v2455_v7 }
 0x14c   :  { %179 = vadd.xlane.f32.xlu0 %v178_v20  ;;  %v182_v22 = vadd.f32 %v181_v21, %v174_v36  ;;  %1749 = vmatprep.subr.bf16.mxu0 %v1748_v39  ;;  %v1760_v20 = vpack.c.bf16 %v383_v17, %v379_v15  ;;  %v1888_v36 = vpack.c.bf16 %v385_v35, %v381_v19  ;;  %v378_v21 = vld [vmem:[#allocation2 + $0x380] sm:$0xff]  ;;  %v396_v19 = vld [vmem:[#allocation2 + $0x410] sm:$0xff] }
 0x14d   :  { %1887 = vmatpush1.bf16.msra.mxu1 %v1886_v16  ;;  %v390_v39 = vld [vmem:[#allocation2 + $0x3e0] sm:$0xff]  ;;  %v400_v35 = vld [vmem:[#allocation2 + $0x430] sm:$0xff] }
 0x14e   :  { %v183_v23 = vadd.f32 %v182_v22, %v175_v38  ;;  %v382_v38 = vld [vmem:[#allocation2 + $0x3a0] sm:$0xff]  ;;  %v380_v22 = vld [vmem:[#allocation2 + $0x390] sm:$0xff]  ;;  %1889 = vmatprep.subr.bf16.mxu1 %v1888_v36  ;;  %v1766_v43 = vpack.c.bf16 %v390_v39, %v386_v34  ;;  %v403_v36 = vld [vmem:[#allocation2 + $0x448] sm:$0xff]  ;;  %v1898_v28 = vpack.c.bf16 %v400_v35, %v396_v19 }
 0x14f   :  { %1751 = vmatpush1.bf16.msra.mxu0 %v1750_v45  ;;  %v1890_v29 = vpack.c.bf16 %v384_v40, %v380_v22  ;;  %v395_v45 = vld [vmem:[#allocation2 + $0x408] sm:$0xff]  ;;  %v409_v40 = vld [vmem:[#allocation2 + $0x478] sm:$0xff]  ;;  %v420_v19 = vld [vmem:[#allocation2 + $0x4d0] sm:$0xff] }
 0x150   :  { %184 = vadd.xlane.f32.xlu1 %v183_v23  ;;  %1753 = vmatprep.subr.bf16.mxu0 %v1752_v52  ;;  %v1762_v23 = vpack.c.bf16 %v382_v38, %v378_v21  ;;  %v1768_v48 = vpack.c.bf16 %v399_v46, %v395_v45  ;;  %v2559_v21 = vrot.slane %v78_v58, %v2460_v9  ;;  %v407_v22 = vld [vmem:[#allocation2 + $0x468] sm:$0xff]  ;;  %v408_v45 = vld [vmem:[#allocation2 + $0x470] sm:$0xff]  ;;  %v414_v58 = vld [vmem:[#allocation2 + $0x4a0] sm:$0xff] }
 0x151   :  { %1891 = vmatpush1.bf16.msra.mxu1 %v1890_v29  ;;  %v424_v35 = vld [vmem:[#allocation2 + $0x4f0] sm:$0xff] }
 0x152   :  { %1893 = vmatprep.subr.bf16.mxu1 %v1892_v37 }
 0x153   :  { %1755 = vmatpush1.bf16.msra.mxu0 %v1754_v57  ;;  %v77_v57 = vld [vmem:[%s2731_s3] sm:$0xf] }
 0x154   :  { %1757 = vmatprep.subr.bf16.mxu0 %v1756_v0  ;;  %v208_v59 = vrot.slane %v77_v57, %v2453_v6  ;;  %v212_v60 = vrot.slane %v77_v57, %v2455_v7  ;;  %v204_v61 = vrot.slane %v77_v57, %v2451_v5  ;;  %v2554_v15 = vrot.slane %v77_v57, %v2460_v9  ;;  %v410_v57 = vld [vmem:[#allocation2 + $0x480] sm:$0xff] }
 0x155   :  { %1895 = vmatpush1.bf16.msra.mxu1 %v1894_v44  ;;  %v404_v44 = vld [vmem:[#allocation2 + $0x450] sm:$0xff] }
 0x156   :  { %1897 = vmatprep.subr.bf16.mxu1 %v1896_v50  ;;  %v413_v50 = vld [vmem:[#allocation2 + $0x498] sm:$0xff] }
 0x157   :  { %1759 = vmatpush1.bf16.msra.mxu0 %v1758_v13 }
 0x158   :  { %1761 = vmatprep.subr.bf16.mxu0 %v1760_v20 }
 0x15b   :  { %1763 = vmatpush1.bf16.msra.mxu0 %v1762_v23  ;;  %v405_v23 = vld [vmem:[#allocation2 + $0x458] sm:$0xff] }
 0x15c   :  { %1765 = vmatprep.subr.bf16.mxu0 %v1764_v30  ;;  %v1900_v42 = vpack.c.bf16 %v409_v40, %v405_v23  ;;  %v430_v23 = vld [vmem:[#allocation2 + $0x520] sm:$0xff] }
 0x15f   :  { %1767 = vmatpush1.bf16.msra.mxu0 %v1766_v43  ;;  %v406_v43 = vld [vmem:[#allocation2 + $0x460] sm:$0xff] }
 0x160   :  { %1769 = vmatprep.subr.bf16.mxu0 %v1768_v48  ;;  %v411_v48 = vld [vmem:[#allocation2 + $0x488] sm:$0xff] }
 0x1d9   :  { %v180_v51 = vpop.xlane.xlu0 %179 }
 0x1da   :  { %v186_v52 = vmul.f32 0.001953125, %v180_v51  ;;  %v417_v51 = vld [vmem:[#allocation2 + $0x4b8] sm:$0xff] }
 0x1dc   :  { %v188_v53 = vadd.f32 1e-05, %v186_v52 }
 0x1dd   :  { %v185_v54 = vpop.xlane.xlu1 %184 }
 0x1de   :  { %2255 = vrsqrt.f32 %v188_v53  ;;  %v187_v55 = vmul.f32 0.001953125, %v185_v54 }
 0x1e0   :  { %v189_v56 = vadd.f32 1e-05, %v187_v55  ;;  %v1774_v55 = vpack.c.bf16 %v406_v43, %v402_v41 }
 0x1e2   :  { %2257 = vrsqrt.f32 %v189_v56  ;;  %v1902_v56 = vpack.c.bf16 %v408_v45, %v404_v44  ;;  %v436_v45 = vld [vmem:[#allocation2 + $0x550] sm:$0xff] }
 0x1e8   :  { %v2256_v62 = vpop.eup %2255 }
 0x1e9   :  { %v193_v0 = vmul.f32 %v2256_v62, %v2501_v4  ;;  %v192_v1 = vmul.f32 %v2256_v62, %v2498_v3  ;;  %v194_v13 = vmul.f32 %v2256_v62, %v2504_v8  ;;  %v195_v24 = vmul.f32 %v2256_v62, %v2507_v11 }
 0x1ea   :  { %v1770_v3 = vpack.c.bf16 %v398_v12, %v394_v10  ;;  %v1776_v62 = vpack.c.bf16 %v415_v49, %v411_v48  ;;  %v1778_v12 = vpack.c.bf16 %v414_v58, %v410_v57  ;;  %v445_v48 = vld [vmem:[#allocation2 + $0x598] sm:$0xff]  ;;  %v448_v57 = vld [vmem:[#allocation2 + $0x5b0] sm:$0xff]  ;;  %v451_v58 = vld [vmem:[#allocation2 + $0x5c8] sm:$0xff] }
 0x1eb   :  { %v222_v16 = vmul.f32 %v208_v59, %v193_v0  ;;  %v221_v17 = vmul.f32 %v204_v61, %v192_v1  ;;  %v223_v4 = vmul.f32 %v212_v60, %v194_v13  ;;  %v224_v29 = vmul.f32 %v2554_v15, %v195_v24  ;;  %v423_v0 = vld [vmem:[#allocation2 + $0x4e8] sm:$0xff]  ;;  %v421_v1 = vld [vmem:[#allocation2 + $0x4d8] sm:$0xff]  ;;  %v422_v24 = vld [vmem:[#allocation2 + $0x4e0] sm:$0xff] }
 0x1ec   :  { %v2556_v20 = vpop.eup %2257 }
 0x1ed   :  { %v251_v8 = vadd.f32 %v237_v63, %v222_v16  ;;  %v250_v38 = vadd.f32 %v233_v2, %v221_v17  ;;  %v197_v11 = vmul.f32 %v2556_v20, %v2519_v27  ;;  %v196_v26 = vmul.f32 %v2556_v20, %v2516_v25 }
 0x1ee   :  { %v2566_v30 = vadd.f32 %v241_v14, %v223_v4  ;;  %v198_v31 = vmul.f32 %v2556_v20, %v2522_v32  ;;  %v1772_v27 = vpack.c.bf16 %v407_v22, %v403_v36  ;;  %v253_v32 = vadd.f32 %v2559_v21, %v224_v29  ;;  %v427_v4 = vld [vmem:[#allocation2 + $0x508] sm:$0xff]  ;;  %v429_v36 = vld [vmem:[#allocation2 + $0x518] sm:$0xff]  ;;  %v426_v22 = vld [vmem:[#allocation2 + $0x500] sm:$0xff] }
 0x1ef   :  { %v259_v33 = vmax.f32 %v251_v8, 0.0  ;;  %v258_v34 = vmax.f32 %v250_v38, 0.0  ;;  %v226_v37 = vmul.f32 %v208_v59, %v197_v11  ;;  %v225_v39 = vmul.f32 %v204_v61, %v196_v26  ;;  %v412_v59 = vld [vmem:[#allocation2 + $0x490] sm:$0xff]  ;;  %v419_v61 = vld [vmem:[#allocation2 + $0x4c8] sm:$0xff]  ;;  %v433_v8 = vld [vmem:[#allocation2 + $0x538] sm:$0xff] }
 0x1f0   :  { %v227_v46 = vmul.f32 %v212_v60, %v198_v31  ;;  %v416_v60 = vld [vmem:[#allocation2 + $0x4b0] sm:$0xff]  ;;  %v261_v10 = vmax.f32 %v253_v32, 0.0  ;;  %v1780_v16 = vpack.c.bf16 %v423_v0, %v419_v61  ;;  %v1910_v11 = vpack.c.bf16 %v424_v35, %v420_v19  ;;  %v435_v31 = vld [vmem:[#allocation2 + $0x548] sm:$0xff]  ;;  %v449_v32 = vld [vmem:[#allocation2 + $0x5b8] sm:$0xff] }
 0x1f1   :  { %610 = vmatprep.mubr.f32.mxu0 %v259_v33  ;;  %764 = vmatprep.mubr.f32.mxu1 %v259_v33  ;;  %v255_v25 = vadd.f32 %v237_v63, %v226_v37  ;;  %v254_v47 = vadd.f32 %v233_v2, %v225_v39  ;;  %v1904_v63 = vpack.c.bf16 %v417_v51, %v413_v50  ;;  %v425_v2 = vld [vmem:[#allocation2 + $0x4f8] sm:$0xff]  ;;  %v432_v29 = vld [vmem:[#allocation2 + $0x530] sm:$0xff]  ;;  %v439_v33 = vld [vmem:[#allocation2 + $0x568] sm:$0xff] }
 0x1f2   :  { %611 = vmatmul.mubr.f32.vlgmr.msra.gmra.mrb[0].mxu0 %v258_v34  ;;  %765 = vmatmul.mubr.f32.vlgmr.msra.gmra.mrb[0].mxu1 %v258_v34  ;;  %v2571_v52 = vadd.f32 %v241_v14, %v227_v46  ;;  %v1906_v13 = vpack.c.bf16 %v416_v60, %v412_v59  ;;  %v418_v14 = vld [vmem:[#allocation2 + $0x4c0] sm:$0xff]  ;;  %v1908_v17 = vpack.c.bf16 %v425_v2, %v421_v1  ;;  %v437_v34 = vld [vmem:[#allocation2 + $0x558] sm:$0xff]  ;;  %v440_v46 = vld [vmem:[#allocation2 + $0x570] sm:$0xff] }
 0x1f3   :  { %1771 = vmatpush1.bf16.msra.mxu0 %v1770_v3  ;;  %1899 = vmatpush1.bf16.msra.mxu1 %v1898_v28  ;;  %v263_v53 = vmax.f32 %v255_v25, 0.0  ;;  %v262_v54 = vmax.f32 %v254_v47, 0.0  ;;  %v431_v3 = vld [vmem:[#allocation2 + $0x528] sm:$0xff]  ;;  %v1782_v38 = vpack.c.bf16 %v422_v24, %v418_v14  ;;  %v1912_v26 = vpack.c.bf16 %v433_v8, %v429_v36  ;;  %v428_v28 = vld [vmem:[#allocation2 + $0x510] sm:$0xff]  ;;  %v441_v37 = vld [vmem:[#allocation2 + $0x578] sm:$0xff] }
 0x1f4   :  { %1773 = vmatprep.subr.bf16.mxu0 %v1772_v27  ;;  %1901 = vmatprep.subr.bf16.mxu1 %v1900_v42  ;;  %v1784_v40 = vpack.c.bf16 %v431_v3, %v427_v4  ;;  %v1786_v39 = vpack.c.bf16 %v430_v23, %v426_v22  ;;  %v1914_v41 = vpack.c.bf16 %v432_v29, %v428_v28  ;;  %v434_v27 = vld [vmem:[#allocation2 + $0x540] sm:$0xff]  ;;  %v443_v25 = vld [vmem:[#allocation2 + $0x588] sm:$0xff]  ;;  %v453_v60 = vld [vmem:[#allocation2 + $0x5d8] sm:$0xff] }
 0x1f5   :  { %616 = vmatprep.mubr.f32.mxu0 %v263_v53  ;;  %770 = vmatprep.mubr.f32.mxu1 %v263_v53  ;;  %v438_v42 = vld [vmem:[#allocation2 + $0x560] sm:$0xff]  ;;  %v1788_v43 = vpack.c.bf16 %v439_v33, %v435_v31  ;;  %v1916_v44 = vpack.c.bf16 %v441_v37, %v437_v34  ;;  %v447_v47 = vld [vmem:[#allocation2 + $0x5a8] sm:$0xff]  ;;  %v1918_v50 = vpack.c.bf16 %v440_v46, %v436_v45  ;;  %v457_v61 = vld [vmem:[#allocation2 + $0x5f8] sm:$0xff] }
 0x1f6   :  { %617 = vmatmul.mubr.f32.gmra.mrb[2].mxu0 %v262_v54  ;;  %771 = vmatmul.mubr.f32.gmra.mrb[2].mxu1 %v262_v54  ;;  %v1790_v49 = vpack.c.bf16 %v438_v42, %v434_v27  ;;  %v442_v51 = vld [vmem:[#allocation2 + $0x580] sm:$0xff]  ;;  %v1792_v54 = vpack.c.bf16 %v447_v47, %v443_v25  ;;  %v455_v59 = vld [vmem:[#allocation2 + $0x5e8] sm:$0xff] }
 0x1f7   :  { %1775 = vmatpush1.bf16.msra.mxu0 %v1774_v55  ;;  %1903 = vmatpush1.bf16.msra.mxu1 %v1902_v56  ;;  %v446_v53 = vld [vmem:[#allocation2 + $0x5a0] sm:$0xff]  ;;  %v1920_v55 = vpack.c.bf16 %v449_v32, %v445_v48  ;;  %v444_v56 = vld [vmem:[#allocation2 + $0x590] sm:$0xff]  ;;  %v1796_v2 = vpack.c.bf16 %v455_v59, %v451_v58  ;;  %v459_v14 = vld [vmem:[#allocation2 + $0x608] sm:$0xff] }
 0x1f8   :  { %687 = vmatprep.mubr.f32.mxu0 %v261_v10  ;;  %841 = vmatprep.mubr.f32.mxu1 %v261_v10  ;;  %v450_v0 = vld [vmem:[#allocation2 + $0x5c0] sm:$0xff]  ;;  %v1924_v10 = vpack.c.bf16 %v457_v61, %v453_v60  ;;  %v463_v24 = vld [vmem:[#allocation2 + $0x628] sm:$0xff] }
 0x1f9   :  { %1777 = vmatprep.subr.bf16.mxu0 %v1776_v62  ;;  %1905 = vmatprep.subr.bf16.mxu1 %v1904_v63  ;;  %v1794_v62 = vpack.c.bf16 %v446_v53, %v442_v51  ;;  %v1922_v63 = vpack.c.bf16 %v448_v57, %v444_v56  ;;  %v454_v1 = vld [vmem:[#allocation2 + $0x5e0] sm:$0xff]  ;;  %v1800_v36 = vpack.c.bf16 %v463_v24, %v459_v14  ;;  %v467_v22 = vld [vmem:[#allocation2 + $0x648] sm:$0xff] }
 0x1fa   :  { %v1798_v19 = vpack.c.bf16 %v454_v1, %v450_v0  ;;  %v458_v4 = vld [vmem:[#allocation2 + $0x600] sm:$0xff]  ;;  %v471_v23 = vld [vmem:[#allocation2 + $0x668] sm:$0xff] }
 0x1fb   :  { %1779 = vmatpush1.bf16.msra.mxu0 %v1778_v12  ;;  %1907 = vmatpush1.bf16.msra.mxu1 %v1906_v13  ;;  %v452_v12 = vld [vmem:[#allocation2 + $0x5d0] sm:$0xff]  ;;  %v462_v3 = vld [vmem:[#allocation2 + $0x620] sm:$0xff]  ;;  %v1804_v34 = vpack.c.bf16 %v471_v23, %v467_v22  ;;  %v475_v27 = vld [vmem:[#allocation2 + $0x688] sm:$0xff] }
 0x1fc   :  { %1781 = vmatprep.subr.bf16.mxu0 %v1780_v16  ;;  %1909 = vmatprep.subr.bf16.mxu1 %v1908_v17  ;;  %v456_v13 = vld [vmem:[#allocation2 + $0x5f0] sm:$0xff]  ;;  %v461_v16 = vld [vmem:[#allocation2 + $0x618] sm:$0xff]  ;;  %v1802_v28 = vpack.c.bf16 %v462_v3, %v458_v4  ;;  %v466_v31 = vld [vmem:[#allocation2 + $0x640] sm:$0xff] }
 0x1fd   :  { %v465_v17 = vld [vmem:[#allocation2 + $0x638] sm:$0xff]  ;;  %v1926_v35 = vpack.c.bf16 %v456_v13, %v452_v12  ;;  %v470_v33 = vld [vmem:[#allocation2 + $0x660] sm:$0xff]  ;;  %v479_v42 = vld [vmem:[#allocation2 + $0x6a8] sm:$0xff] }
 0x1fe   :  { %v1928_v8 = vpack.c.bf16 %v465_v17, %v461_v16  ;;  %v1806_v45 = vpack.c.bf16 %v470_v33, %v466_v31  ;;  %v474_v25 = vld [vmem:[#allocation2 + $0x680] sm:$0xff]  ;;  %v1808_v48 = vpack.c.bf16 %v479_v42, %v475_v27  ;;  %v483_v51 = vld [vmem:[#allocation2 + $0x6c8] sm:$0xff] }
 0x1ff   :  { %1783 = vmatpush1.bf16.msra.mxu0 %v1782_v38  ;;  %1911 = vmatpush1.bf16.msra.mxu1 %v1910_v11  ;;  %v460_v38 = vld [vmem:[#allocation2 + $0x610] sm:$0xff]  ;;  %v478_v47 = vld [vmem:[#allocation2 + $0x6a0] sm:$0xff]  ;;  %v487_v53 = vld [vmem:[#allocation2 + $0x6e8] sm:$0xff] }
 0x200   :  { %1785 = vmatprep.subr.bf16.mxu0 %v1784_v40  ;;  %1913 = vmatprep.subr.bf16.mxu1 %v1912_v26  ;;  %v464_v11 = vld [vmem:[#allocation2 + $0x630] sm:$0xff]  ;;  %v469_v40 = vld [vmem:[#allocation2 + $0x658] sm:$0xff]  ;;  %v1810_v56 = vpack.c.bf16 %v478_v47, %v474_v25  ;;  %v482_v58 = vld [vmem:[#allocation2 + $0x6c0] sm:$0xff]  ;;  %v1812_v60 = vpack.c.bf16 %v487_v53, %v483_v51 }
 0x201   :  { %v473_v26 = vld [vmem:[#allocation2 + $0x678] sm:$0xff]  ;;  %v1930_v29 = vpack.c.bf16 %v464_v11, %v460_v38  ;;  %v486_v59 = vld [vmem:[#allocation2 + $0x6e0] sm:$0xff]  ;;  %v491_v0 = vld [vmem:[#allocation2 + $0x708] sm:$0xff] }
 0x202   :  { %v1932_v37 = vpack.c.bf16 %v473_v26, %v469_v40  ;;  %v495_v1 = vld [vmem:[#allocation2 + $0x728] sm:$0xff]  ;;  %v1814_v12 = vpack.c.bf16 %v486_v59, %v482_v58  ;;  %v490_v14 = vld [vmem:[#allocation2 + $0x700] sm:$0xff]  ;;  %v520_v58 = vld [vmem:[#allocation2 + $0x7f0] sm:$0xff] }
 0x203   :  { %1787 = vmatpush1.bf16.msra.mxu0 %v1786_v39  ;;  %1915 = vmatpush1.bf16.msra.mxu1 %v1914_v41  ;;  %v468_v39 = vld [vmem:[#allocation2 + $0x650] sm:$0xff]  ;;  %v494_v24 = vld [vmem:[#allocation2 + $0x720] sm:$0xff]  ;;  %v1816_v16 = vpack.c.bf16 %v495_v1, %v491_v0  ;;  %v499_v4 = vld [vmem:[#allocation2 + $0x748] sm:$0xff] }
 0x204   :  { %1789 = vmatprep.subr.bf16.mxu0 %v1788_v43  ;;  %1917 = vmatprep.subr.bf16.mxu1 %v1916_v44  ;;  %v472_v41 = vld [vmem:[#allocation2 + $0x670] sm:$0xff]  ;;  %v477_v43 = vld [vmem:[#allocation2 + $0x698] sm:$0xff]  ;;  %v503_v3 = vld [vmem:[#allocation2 + $0x768] sm:$0xff]  ;;  %v1818_v38 = vpack.c.bf16 %v494_v24, %v490_v14 }
 0x205   :  { %v481_v44 = vld [vmem:[#allocation2 + $0x6b8] sm:$0xff]  ;;  %v1934_v46 = vpack.c.bf16 %v472_v41, %v468_v39  ;;  %v498_v22 = vld [vmem:[#allocation2 + $0x740] sm:$0xff]  ;;  %v1820_v40 = vpack.c.bf16 %v503_v3, %v499_v4  ;;  %v507_v31 = vld [vmem:[#allocation2 + $0x788] sm:$0xff] }
 0x206   :  { %v1936_v32 = vpack.c.bf16 %v481_v44, %v477_v43  ;;  %v502_v23 = vld [vmem:[#allocation2 + $0x760] sm:$0xff]  ;;  %v511_v33 = vld [vmem:[#allocation2 + $0x7a8] sm:$0xff] }
 0x207   :  { %1791 = vmatpush1.bf16.msra.mxu0 %v1790_v49  ;;  %1919 = vmatpush1.bf16.msra.mxu1 %v1918_v50  ;;  %v476_v49 = vld [vmem:[#allocation2 + $0x690] sm:$0xff]  ;;  %v1822_v39 = vpack.c.bf16 %v502_v23, %v498_v22  ;;  %v506_v27 = vld [vmem:[#allocation2 + $0x780] sm:$0xff]  ;;  %v1824_v43 = vpack.c.bf16 %v511_v33, %v507_v31  ;;  %v515_v25 = vld [vmem:[#allocation2 + $0x7c8] sm:$0xff] }
 0x208   :  { %1793 = vmatprep.subr.bf16.mxu0 %v1792_v54  ;;  %1921 = vmatprep.subr.bf16.mxu1 %v1920_v55  ;;  %v480_v50 = vld [vmem:[#allocation2 + $0x6b0] sm:$0xff]  ;;  %v485_v54 = vld [vmem:[#allocation2 + $0x6d8] sm:$0xff]  ;;  %v510_v42 = vld [vmem:[#allocation2 + $0x7a0] sm:$0xff] }
 0x209   :  { %v489_v55 = vld [vmem:[#allocation2 + $0x6f8] sm:$0xff]  ;;  %v1938_v57 = vpack.c.bf16 %v480_v50, %v476_v49  ;;  %v519_v47 = vld [vmem:[#allocation2 + $0x7e8] sm:$0xff]  ;;  %v199_v49 = vmul.f32 %v2556_v20, %v2527_v18  ;;  %v1826_v50 = vpack.c.bf16 %v510_v42, %v506_v27  ;;  %v514_v53 = vld [vmem:[#allocation2 + $0x7c0] sm:$0xff]  ;;  %v260_v20 = vmax.f32 %v2566_v30, 0.0 }
 0x20a   :  { %v1940_v61 = vpack.c.bf16 %v489_v55, %v485_v54  ;;  %v1828_v54 = vpack.c.bf16 %v519_v47, %v515_v25  ;;  %v977_v31 = vld [vmem:[#allocation5 + $0x28] sm:$0xff]  ;;  %v975_v33 = vld [vmem:[#allocation5 + $0x18] sm:$0xff] }
 0x20b   :  { %1795 = vmatpush1.bf16.msra.mxu0 %v1794_v62  ;;  %1923 = vmatpush1.bf16.msra.mxu1 %v1922_v63  ;;  %v484_v62 = vld [vmem:[#allocation2 + $0x6d0] sm:$0xff]  ;;  %v228_v59 = vmul.f32 %v2554_v15, %v199_v49  ;;  %v522_v15 = vld [vmem:[%s2734_s6] sm:$0xf]  ;;  %v985_v25 = vld [vmem:[#allocation5 + $0x68] sm:$0xff] }
 0x20c   :  { %1797 = vmatprep.subr.bf16.mxu0 %v1796_v2  ;;  %1925 = vmatprep.subr.bf16.mxu1 %v1924_v10  ;;  %v488_v63 = vld [vmem:[#allocation2 + $0x6f0] sm:$0xff]  ;;  %v493_v2 = vld [vmem:[#allocation2 + $0x718] sm:$0xff]  ;;  %v529_v0 = vrot.slane %v522_v15, %v2451_v5  ;;  %v537_v30 = vrot.slane %v522_v15, %v2455_v7 }
 0x20d   :  { %v497_v10 = vld [vmem:[#allocation2 + $0x738] sm:$0xff]  ;;  %v1942_v13 = vpack.c.bf16 %v488_v63, %v484_v62  ;;  %v257_v18 = vadd.f32 %v2559_v21, %v228_v59  ;;  %v264_v63 = vmax.f32 %v2571_v52, 0.0  ;;  %v533_v21 = vrot.slane %v522_v15, %v2453_v6 }
 0x20e   :  { %v1944_v17 = vpack.c.bf16 %v497_v10, %v493_v2  ;;  %v541_v52 = vrot.slane %v522_v15, %v2460_v9  ;;  %v983_v47 = vld [vmem:[#allocation5 + $0x58] sm:$0xff]  ;;  %v994_v15 = vld [vmem:[#allocation5 + $0xb0] sm:$0xff] }
 0x20f   :  { %1799 = vmatpush1.bf16.msra.mxu0 %v1798_v19  ;;  %1927 = vmatpush1.bf16.msra.mxu1 %v1926_v35  ;;  %v492_v19 = vld [vmem:[#allocation2 + $0x710] sm:$0xff]  ;;  %v265_v62 = vmax.f32 %v257_v18, 0.0  ;;  %v988_v18 = vld [vmem:[#allocation5 + $0x80] sm:$0xff] }
 0x210   :  { %1801 = vmatprep.subr.bf16.mxu0 %v1800_v36  ;;  %1929 = vmatprep.subr.bf16.mxu1 %v1928_v8  ;;  %v496_v35 = vld [vmem:[#allocation2 + $0x730] sm:$0xff]  ;;  %v501_v36 = vld [vmem:[#allocation2 + $0x758] sm:$0xff] }
 0x211   :  { %v505_v8 = vld [vmem:[#allocation2 + $0x778] sm:$0xff]  ;;  %v1946_v11 = vpack.c.bf16 %v496_v35, %v492_v19 }
 0x212   :  { %v1948_v26 = vpack.c.bf16 %v505_v8, %v501_v36 }
 0x213   :  { %1803 = vmatpush1.bf16.msra.mxu0 %v1802_v28  ;;  %1931 = vmatpush1.bf16.msra.mxu1 %v1930_v29  ;;  %v500_v28 = vld [vmem:[#allocation2 + $0x750] sm:$0xff] }
 0x214   :  { %1805 = vmatprep.subr.bf16.mxu0 %v1804_v34  ;;  %1933 = vmatprep.subr.bf16.mxu1 %v1932_v37  ;;  %v504_v29 = vld [vmem:[#allocation2 + $0x770] sm:$0xff]  ;;  %v509_v34 = vld [vmem:[#allocation2 + $0x798] sm:$0xff] }
 0x215   :  { %v513_v37 = vld [vmem:[#allocation2 + $0x7b8] sm:$0xff]  ;;  %v1950_v41 = vpack.c.bf16 %v504_v29, %v500_v28  ;;  %v973_v29 = vld [vmem:[#allocation5 + $0x8] sm:$0xff] }
 0x216   :  { %v1952_v44 = vpack.c.bf16 %v513_v37, %v509_v34  ;;  %v1960_v34 = vpack.c.bf16 %v977_v31, %v973_v29  ;;  %v979_v37 = vld [vmem:[#allocation5 + $0x38] sm:$0xff]  ;;  %v1004_v31 = vld [vmem:[#allocation5 + $0x100] sm:$0xff] }
 0x217   :  { %1807 = vmatpush1.bf16.msra.mxu0 %v1806_v45  ;;  %1935 = vmatpush1.bf16.msra.mxu1 %v1934_v46  ;;  %v508_v45 = vld [vmem:[#allocation2 + $0x790] sm:$0xff]  ;;  %v2088_v27 = vpack.c.bf16 %v979_v37, %v975_v33  ;;  %v1008_v33 = vld [vmem:[#allocation5 + $0x120] sm:$0xff] }
 0x218   :  { %1809 = vmatprep.subr.bf16.mxu0 %v1808_v48  ;;  %1937 = vmatprep.subr.bf16.mxu1 %v1936_v32  ;;  %v512_v46 = vld [vmem:[#allocation2 + $0x7b0] sm:$0xff]  ;;  %v517_v48 = vld [vmem:[#allocation2 + $0x7d8] sm:$0xff] }
 0x219   :  { %v521_v32 = vld [vmem:[#allocation2 + $0x7f8] sm:$0xff]  ;;  %v1954_v51 = vpack.c.bf16 %v512_v46, %v508_v45  ;;  %v981_v45 = vld [vmem:[#allocation5 + $0x48] sm:$0xff] }
 0x21a   :  { %v1956_v55 = vpack.c.bf16 %v521_v32, %v517_v48  ;;  %v987_v48 = vld [vmem:[#allocation5 + $0x78] sm:$0xff]  ;;  %v1964_v32 = vpack.c.bf16 %v985_v25, %v981_v45  ;;  %v1012_v25 = vld [vmem:[#allocation5 + $0x140] sm:$0xff] }
 0x21b   :  { %1811 = vmatpush1.bf16.msra.mxu0 %v1810_v56  ;;  %1939 = vmatpush1.bf16.msra.mxu1 %v1938_v57  ;;  %v518_v56 = vld [vmem:[#allocation2 + $0x7e0] sm:$0xff]  ;;  %v516_v57 = vld [vmem:[#allocation2 + $0x7d0] sm:$0xff]  ;;  %v2092_v49 = vpack.c.bf16 %v987_v48, %v983_v47 }
 0x21c   :  { %1813 = vmatprep.subr.bf16.mxu0 %v1812_v60  ;;  %1941 = vmatprep.subr.bf16.mxu1 %v1940_v61  ;;  %v1830_v60 = vpack.c.bf16 %v518_v56, %v514_v53  ;;  %v1958_v61 = vpack.c.bf16 %v520_v58, %v516_v57  ;;  %v982_v53 = vld [vmem:[#allocation5 + $0x50] sm:$0xff]  ;;  %v989_v56 = vld [vmem:[#allocation5 + $0x88] sm:$0xff]  ;;  %v1016_v47 = vld [vmem:[#allocation5 + $0x160] sm:$0xff] }
 0x21d   :  { %v993_v57 = vld [vmem:[#allocation5 + $0xa8] sm:$0xff]  ;;  %v1014_v48 = vld [vmem:[#allocation5 + $0x150] sm:$0xff] }
 0x21e   :  { %v1968_v59 = vpack.c.bf16 %v993_v57, %v989_v56 }
 0x21f   :  { %1815 = vmatpush1.bf16.msra.mxu0 %v1814_v12  ;;  %1943 = vmatpush1.bf16.msra.mxu1 %v1942_v13 }
 0x220   :  { %1817 = vmatprep.subr.bf16.mxu0 %v1816_v16  ;;  %1945 = vmatprep.subr.bf16.mxu1 %v1944_v17 }
 0x223   :  { %1819 = vmatpush1.bf16.msra.mxu0 %v1818_v38  ;;  %1947 = vmatpush1.bf16.msra.mxu1 %v1946_v11 }
 0x224   :  { %1821 = vmatprep.subr.bf16.mxu0 %v1820_v40  ;;  %1949 = vmatprep.subr.bf16.mxu1 %v1948_v26 }
 0x227   :  { %1823 = vmatpush1.bf16.msra.mxu0 %v1822_v39  ;;  %1951 = vmatpush1.bf16.msra.mxu1 %v1950_v41  ;;  %v972_v39 = vld [vmem:[#allocation5] sm:$0xff] }
 0x228   :  { %1825 = vmatprep.subr.bf16.mxu0 %v1824_v43  ;;  %1953 = vmatprep.subr.bf16.mxu1 %v1952_v44  ;;  %v976_v41 = vld [vmem:[#allocation5 + $0x20] sm:$0xff]  ;;  %v974_v43 = vld [vmem:[#allocation5 + $0x10] sm:$0xff] }
 0x229   :  { %v1962_v42 = vpack.c.bf16 %v976_v41, %v972_v39  ;;  %v978_v44 = vld [vmem:[#allocation5 + $0x30] sm:$0xff]  ;;  %v1013_v41 = vld [vmem:[#allocation5 + $0x148] sm:$0xff] }
 0x22a   :  { %v2090_v46 = vpack.c.bf16 %v978_v44, %v974_v43  ;;  %v1010_v39 = vld [vmem:[#allocation5 + $0x130] sm:$0xff]  ;;  %v1019_v43 = vld [vmem:[#allocation5 + $0x178] sm:$0xff]  ;;  %v1978_v44 = vpack.c.bf16 %v1008_v33, %v1004_v31  ;;  %v1045_v33 = vld [vmem:[#allocation5 + $0x248] sm:$0xff] }
 0x22b   :  { %1827 = vmatpush1.bf16.msra.mxu0 %v1826_v50  ;;  %1955 = vmatpush1.bf16.msra.mxu1 %v1954_v51  ;;  %v980_v50 = vld [vmem:[#allocation5 + $0x40] sm:$0xff]  ;;  %v1042_v31 = vld [vmem:[#allocation5 + $0x230] sm:$0xff] }
 0x22c   :  { %1829 = vmatprep.subr.bf16.mxu0 %v1828_v54  ;;  %1957 = vmatprep.subr.bf16.mxu1 %v1956_v55  ;;  %v984_v51 = vld [vmem:[#allocation5 + $0x60] sm:$0xff]  ;;  %v986_v55 = vld [vmem:[#allocation5 + $0x70] sm:$0xff] }
 0x22d   :  { %v1966_v54 = vpack.c.bf16 %v984_v51, %v980_v50  ;;  %v2094_v58 = vpack.c.bf16 %v986_v55, %v982_v53  ;;  %v1021_v50 = vld [vmem:[#allocation5 + $0x188] sm:$0xff]  ;;  %v1023_v53 = vld [vmem:[#allocation5 + $0x198] sm:$0xff]  ;;  %v1982_v55 = vpack.c.bf16 %v1016_v47, %v1012_v25  ;;  %v1050_v25 = vld [vmem:[#allocation5 + $0x270] sm:$0xff] }
 0x22e   :  { %v1025_v51 = vld [vmem:[#allocation5 + $0x1a8] sm:$0xff] }
 0x22f   :  { %1831 = vmatpush1.bf16.msra.mxu0 %v1830_v60  ;;  %1959 = vmatpush1.bf16.msra.mxu1 %v1958_v61  ;;  %v991_v60 = vld [vmem:[#allocation5 + $0x98] sm:$0xff]  ;;  %v1984_v57 = vpack.c.bf16 %v1025_v51, %v1021_v50  ;;  %v1053_v47 = vld [vmem:[#allocation5 + $0x288] sm:$0xff] }
 0x230   :  { %1961 = vmatprep.subr.bf16.mxu0 %v1960_v34  ;;  %2089 = vmatprep.subr.bf16.mxu1 %v2088_v27  ;;  %v995_v61 = vld [vmem:[#allocation5 + $0xb8] sm:$0xff]  ;;  %v1006_v34 = vld [vmem:[#allocation5 + $0x110] sm:$0xff]  ;;  %v1017_v27 = vld [vmem:[#allocation5 + $0x168] sm:$0xff] }
 0x231   :  { %v2106_v45 = vpack.c.bf16 %v1010_v39, %v1006_v34  ;;  %v1049_v34 = vld [vmem:[#allocation5 + $0x268] sm:$0xff]  ;;  %v1051_v39 = vld [vmem:[#allocation5 + $0x278] sm:$0xff] }
 0x232   :  { %688 = vmatmul.mubr.f32.vlgmr.msra.gmra.mrb[0].mxu0 %v260_v20  ;;  %842 = vmatmul.mubr.f32.vlgmr.msra.gmra.mrb[0].mxu1 %v260_v20  ;;  %v2096_v20 = vpack.c.bf16 %v995_v61, %v991_v60  ;;  %v1022_v60 = vld [vmem:[#allocation5 + $0x190] sm:$0xff] }
 0x233   :  { %693 = vmatprep.mubr.f32.mxu0 %v265_v62  ;;  %847 = vmatprep.mubr.f32.mxu1 %v265_v62  ;;  %v992_v62 = vld [vmem:[#allocation5 + $0xa0] sm:$0xff] }
 0x234   :  { %1963 = vmatpush1.bf16.msra.mxu0 %v1962_v42  ;;  %2091 = vmatpush1.bf16.msra.mxu1 %v2090_v46  ;;  %v1015_v42 = vld [vmem:[#allocation5 + $0x158] sm:$0xff]  ;;  %v1980_v46 = vpack.c.bf16 %v1017_v27, %v1013_v41 }
 0x235   :  { %1965 = vmatprep.subr.bf16.mxu0 %v1964_v32  ;;  %2093 = vmatprep.subr.bf16.mxu1 %v2092_v49  ;;  %v2108_v32 = vpack.c.bf16 %v1019_v43, %v1015_v42  ;;  %v1018_v49 = vld [vmem:[#allocation5 + $0x170] sm:$0xff]  ;;  %v1996_v42 = vpack.c.bf16 %v1049_v34, %v1045_v33  ;;  %v1044_v43 = vld [vmem:[#allocation5 + $0x240] sm:$0xff] }
 0x236   :  { %694 = vmatmul.mubr.f32.gmra.mrb[2].mxu0 %v264_v63  ;;  %848 = vmatmul.mubr.f32.gmra.mrb[2].mxu1 %v264_v63  ;;  %v990_v63 = vld [vmem:[#allocation5 + $0x90] sm:$0xff]  ;;  %v2110_v56 = vpack.c.bf16 %v1018_v49, %v1014_v48  ;;  %v1057_v48 = vld [vmem:[#allocation5 + $0x2a8] sm:$0xff]  ;;  %v1059_v49 = vld [vmem:[#allocation5 + $0x2b8] sm:$0xff] }
 0x237   :  { %v1062_v34 = vld [vmem:[#allocation5 + $0x2d0] sm:$0xff] }
 0x238   :  { %1967 = vmatpush1.bf16.msra.mxu0 %v1966_v54  ;;  %2095 = vmatpush1.bf16.msra.mxu1 %v2094_v58  ;;  %v1027_v54 = vld [vmem:[#allocation5 + $0x1b8] sm:$0xff]  ;;  %v1020_v58 = vld [vmem:[#allocation5 + $0x180] sm:$0xff] }
 0x239   :  { %1969 = vmatprep.subr.bf16.mxu0 %v1968_v59  ;;  %2097 = vmatprep.subr.bf16.mxu1 %v2096_v20  ;;  %v1024_v59 = vld [vmem:[#allocation5 + $0x1a0] sm:$0xff]  ;;  %v2112_v61 = vpack.c.bf16 %v1027_v54, %v1023_v53  ;;  %v1029_v20 = vld [vmem:[#allocation5 + $0x1c8] sm:$0xff]  ;;  %v2000_v53 = vpack.c.bf16 %v1057_v48, %v1053_v47  ;;  %v1070_v48 = vld [vmem:[#allocation5 + $0x310] sm:$0xff] }
 0x305   :  { %v689_v1 = vpop.f32.mrb[0].mxu0  ;;  %v843_v2 = vpop.f32.mrb[0].mxu1 }
 0x306   :  { %v2585_v10 = vadd.f32 %v689_v1, %v529_v0  ;;  %v691_v12 = vpop.f32.mrb[1].mxu0  ;;  %v845_v13 = vpop.f32.mrb[1].mxu1  ;;  %v2590_v24 = vadd.f32 %v843_v2, %v537_v30  ;;  %v1001_v1 = vld [vmem:[#allocation5 + $0xe8] sm:$0xff]  ;;  %v2098_v2 = vpack.c.bf16 %v994_v15, %v990_v63  ;;  %v1031_v63 = vld [vmem:[#allocation5 + $0x1d8] sm:$0xff] }
 0x307   :  { %v2587_v14 = vadd.f32 %v691_v12, %v533_v21  ;;  %v2596_v36 = vadd.f32 %v845_v13, %v541_v52  ;;  %v1003_v13 = vld [vmem:[#allocation5 + $0xf8] sm:$0xff] }
 0x308   :  { %2099 = vmatpush1.bf16.msra.mxu1 %v2098_v2  ;;  %v1035_v15 = vld [vmem:[#allocation5 + $0x1f8] sm:$0xff]  ;;  %v1032_v2 = vld [vmem:[#allocation5 + $0x1e0] sm:$0xff] }
 0x309   :  { %v854_v16 = vadd.f32 %v2587_v14, %v2585_v10  ;;  %v695_v17 = vpop.f32.mrb[2].mxu0  ;;  %v849_v19 = vpop.f32.mrb[2].mxu1 }
 0x30a   :  { %v2594_v35 = vadd.f32 %v695_v17, %v529_v0  ;;  %v697_v4 = vpop.f32.mrb[3].mxu0  ;;  %v851_v3 = vpop.f32.mrb[3].mxu1  ;;  %v2601_v11 = vadd.f32 %v849_v19, %v537_v30  ;;  %v1970_v0 = vpack.c.bf16 %v992_v62, %v988_v18  ;;  %v999_v30 = vld [vmem:[#allocation5 + $0xd8] sm:$0xff]  ;;  %v998_v19 = vld [vmem:[#allocation5 + $0xd0] sm:$0xff]  ;;  %v1033_v62 = vld [vmem:[#allocation5 + $0x1e8] sm:$0xff] }
 0x30b   :  { %v2598_v8 = vadd.f32 %v697_v4, %v533_v21  ;;  %v855_v38 = vadd.f32 %v2590_v24, %v854_v16  ;;  %v2606_v40 = vadd.f32 %v851_v3, %v541_v52  ;;  %v997_v21 = vld [vmem:[#allocation5 + $0xc8] sm:$0xff]  ;;  %v996_v52 = vld [vmem:[#allocation5 + $0xc0] sm:$0xff]  ;;  %v2100_v17 = vpack.c.bf16 %v1003_v13, %v999_v30  ;;  %v1002_v4 = vld [vmem:[#allocation5 + $0xf0] sm:$0xff] }
 0x30c   :  { %v1972_v12 = vpack.c.bf16 %v1001_v1, %v997_v21  ;;  %v1000_v16 = vld [vmem:[#allocation5 + $0xe0] sm:$0xff]  ;;  %v1005_v3 = vld [vmem:[#allocation5 + $0x108] sm:$0xff]  ;;  %1971 = vmatpush1.bf16.msra.mxu0 %v1970_v0  ;;  %v1026_v18 = vld [vmem:[#allocation5 + $0x1b0] sm:$0xff]  ;;  %v1986_v0 = vpack.c.bf16 %v1024_v59, %v1020_v58  ;;  %v1988_v1 = vpack.c.bf16 %v1033_v62, %v1029_v20  ;;  %v2116_v13 = vpack.c.bf16 %v1035_v15, %v1031_v63 }
 0x30d   :  { %v859_v22 = vadd.f32 %v2598_v8, %v2594_v35  ;;  %v856_v23 = vadd.f32 %v2596_v36, %v855_v38  ;;  %v1009_v38 = vld [vmem:[#allocation5 + $0x128] sm:$0xff]  ;;  %2101 = vmatprep.subr.bf16.mxu1 %v2100_v17  ;;  %v2114_v21 = vpack.c.bf16 %v1026_v18, %v1022_v60  ;;  %v1028_v30 = vld [vmem:[#allocation5 + $0x1c0] sm:$0xff] }
 0x30e   :  { %1973 = vmatprep.subr.bf16.mxu0 %v1972_v12  ;;  %v1976_v29 = vpack.c.bf16 %v1009_v38, %v1005_v3  ;;  %v1030_v12 = vld [vmem:[#allocation5 + $0x1d0] sm:$0xff]  ;;  %v1041_v17 = vld [vmem:[#allocation5 + $0x228] sm:$0xff]  ;;  %v1990_v3 = vpack.c.bf16 %v1032_v2, %v1028_v30 }
 0x30f   :  { %857 = vadd.xlane.f32.xlu1 %v856_v23  ;;  %v860_v26 = vadd.f32 %v2601_v11, %v859_v22  ;;  %v1007_v22 = vld [vmem:[#allocation5 + $0x118] sm:$0xff] }
 0x310   :  { %v1011_v23 = vld [vmem:[#allocation5 + $0x138] sm:$0xff] }
 0x311   :  { %v861_v28 = vadd.f32 %v2606_v40, %v860_v26  ;;  %v1974_v26 = vpack.c.bf16 %v1000_v16, %v996_v52  ;;  %v2104_v37 = vpack.c.bf16 %v1011_v23, %v1007_v22  ;;  %v1034_v52 = vld [vmem:[#allocation5 + $0x1f0] sm:$0xff]  ;;  %v1037_v16 = vld [vmem:[#allocation5 + $0x208] sm:$0xff]  ;;  %v1036_v23 = vld [vmem:[#allocation5 + $0x200] sm:$0xff] }
 0x312   :  { %v2118_v38 = vpack.c.bf16 %v1034_v52, %v1030_v12  ;;  %v1992_v22 = vpack.c.bf16 %v1041_v17, %v1037_v16  ;;  %v1056_v52 = vld [vmem:[#allocation5 + $0x2a0] sm:$0xff]  ;;  %v1054_v16 = vld [vmem:[#allocation5 + $0x290] sm:$0xff] }
 0x313   :  { %862 = vadd.xlane.f32.xlu1 %v861_v28  ;;  %v2102_v28 = vpack.c.bf16 %v1002_v4, %v998_v19  ;;  %1975 = vmatpush1.bf16.msra.mxu0 %v1974_v26  ;;  %v1039_v19 = vld [vmem:[#allocation5 + $0x218] sm:$0xff]  ;;  %v1040_v26 = vld [vmem:[#allocation5 + $0x220] sm:$0xff] }
 0x314   :  { %1977 = vmatprep.subr.bf16.mxu0 %v1976_v29  ;;  %v1043_v4 = vld [vmem:[#allocation5 + $0x238] sm:$0xff]  ;;  %v1994_v41 = vpack.c.bf16 %v1040_v26, %v1036_v23 }
 0x315   :  { %2103 = vmatpush1.bf16.msra.mxu1 %v2102_v28  ;;  %v1038_v28 = vld [vmem:[#allocation5 + $0x210] sm:$0xff]  ;;  %v2120_v29 = vpack.c.bf16 %v1043_v4, %v1039_v19  ;;  %v1067_v26 = vld [vmem:[#allocation5 + $0x2f8] sm:$0xff] }
 0x316   :  { %2105 = vmatprep.subr.bf16.mxu1 %v2104_v37  ;;  %v1047_v37 = vld [vmem:[#allocation5 + $0x258] sm:$0xff]  ;;  %v2122_v27 = vpack.c.bf16 %v1042_v31, %v1038_v28  ;;  %v1058_v19 = vld [vmem:[#allocation5 + $0x2b0] sm:$0xff]  ;;  %v1060_v28 = vld [vmem:[#allocation5 + $0x2c0] sm:$0xff] }
 0x317   :  { %1979 = vmatpush1.bf16.msra.mxu0 %v1978_v44  ;;  %v1048_v44 = vld [vmem:[#allocation5 + $0x260] sm:$0xff]  ;;  %v2130_v4 = vpack.c.bf16 %v1058_v19, %v1054_v16  ;;  %v1097_v16 = vld [vmem:[#allocation5 + $0x3e8] sm:$0xff] }
 0x318   :  { %1981 = vmatprep.subr.bf16.mxu0 %v1980_v46  ;;  %v2124_v46 = vpack.c.bf16 %v1051_v39, %v1047_v37  ;;  %v1998_v50 = vpack.c.bf16 %v1048_v44, %v1044_v43  ;;  %v1066_v37 = vld [vmem:[#allocation5 + $0x2f0] sm:$0xff]  ;;  %v1075_v44 = vld [vmem:[#allocation5 + $0x338] sm:$0xff] }
 0x319   :  { %2107 = vmatpush1.bf16.msra.mxu1 %v2106_v45  ;;  %v1046_v45 = vld [vmem:[#allocation5 + $0x250] sm:$0xff]  ;;  %v2134_v39 = vpack.c.bf16 %v1066_v37, %v1062_v34  ;;  %v1105_v34 = vld [vmem:[#allocation5 + $0x428] sm:$0xff]  ;;  %v1103_v37 = vld [vmem:[#allocation5 + $0x418] sm:$0xff] }
 0x31a   :  { %2109 = vmatprep.subr.bf16.mxu1 %v2108_v32  ;;  %v1055_v32 = vld [vmem:[#allocation5 + $0x298] sm:$0xff]  ;;  %v2126_v51 = vpack.c.bf16 %v1050_v25, %v1046_v45  ;;  %v1068_v45 = vld [vmem:[#allocation5 + $0x300] sm:$0xff] }
 0x31b   :  { %1983 = vmatpush1.bf16.msra.mxu0 %v1982_v55  ;;  %v2128_v54 = vpack.c.bf16 %v1059_v49, %v1055_v32  ;;  %v1074_v32 = vld [vmem:[#allocation5 + $0x330] sm:$0xff] }
 0x31c   :  { %1985 = vmatprep.subr.bf16.mxu0 %v1984_v57  ;;  %v2138_v49 = vpack.c.bf16 %v1074_v32, %v1070_v48  ;;  %v524_v48 = vld [vmem:[%s2736_s8] sm:$0xf] }
 0x31d   :  { %2111 = vmatpush1.bf16.msra.mxu1 %v2110_v56 }
 0x31e   :  { %2113 = vmatprep.subr.bf16.mxu1 %v2112_v61 }
 0x31f   :  { %1987 = vmatpush1.bf16.msra.mxu0 %v1986_v0 }
 0x320   :  { %1989 = vmatprep.subr.bf16.mxu0 %v1988_v1 }
 0x321   :  { %2115 = vmatpush1.bf16.msra.mxu1 %v2114_v21 }
 0x322   :  { %2117 = vmatprep.subr.bf16.mxu1 %v2116_v13 }
 0x323   :  { %1991 = vmatpush1.bf16.msra.mxu0 %v1990_v3  ;;  %v1061_v3 = vld [vmem:[#allocation5 + $0x2c8] sm:$0xff] }
 0x324   :  { %1993 = vmatprep.subr.bf16.mxu0 %v1992_v22  ;;  %v1063_v22 = vld [vmem:[#allocation5 + $0x2d8] sm:$0xff] }
 0x325   :  { %2119 = vmatpush1.bf16.msra.mxu1 %v2118_v38  ;;  %v1065_v38 = vld [vmem:[#allocation5 + $0x2e8] sm:$0xff]  ;;  %v2132_v31 = vpack.c.bf16 %v1067_v26, %v1063_v22  ;;  %v1094_v26 = vld [vmem:[#allocation5 + $0x3d0] sm:$0xff] }
 0x326   :  { %2121 = vmatprep.subr.bf16.mxu1 %v2120_v29  ;;  %v2004_v23 = vpack.c.bf16 %v1065_v38, %v1061_v3  ;;  %v1064_v29 = vld [vmem:[#allocation5 + $0x2e0] sm:$0xff]  ;;  %v1099_v3 = vld [vmem:[#allocation5 + $0x3f8] sm:$0xff] }
 0x327   :  { %1995 = vmatpush1.bf16.msra.mxu0 %v1994_v41  ;;  %v2006_v33 = vpack.c.bf16 %v1064_v29, %v1060_v28  ;;  %v1069_v41 = vld [vmem:[#allocation5 + $0x308] sm:$0xff]  ;;  %v1092_v38 = vld [vmem:[#allocation5 + $0x3c0] sm:$0xff]  ;;  %v1098_v28 = vld [vmem:[#allocation5 + $0x3f0] sm:$0xff] }
 0x328   :  { %1997 = vmatprep.subr.bf16.mxu0 %v1996_v42  ;;  %v1071_v42 = vld [vmem:[#allocation5 + $0x318] sm:$0xff] }
 0x329   :  { %2123 = vmatpush1.bf16.msra.mxu1 %v2122_v27  ;;  %v1073_v27 = vld [vmem:[#allocation5 + $0x328] sm:$0xff]  ;;  %v2136_v25 = vpack.c.bf16 %v1075_v44, %v1071_v42 }
 0x32a   :  { %2125 = vmatprep.subr.bf16.mxu1 %v2124_v46  ;;  %v2008_v43 = vpack.c.bf16 %v1073_v27, %v1069_v41  ;;  %v1072_v46 = vld [vmem:[#allocation5 + $0x320] sm:$0xff]  ;;  %v1107_v41 = vld [vmem:[#allocation5 + $0x438] sm:$0xff] }
 0x32b   :  { %1999 = vmatpush1.bf16.msra.mxu0 %v1998_v50  ;;  %v2010_v47 = vpack.c.bf16 %v1072_v46, %v1068_v45  ;;  %v1077_v50 = vld [vmem:[#allocation5 + $0x348] sm:$0xff]  ;;  %v2152_v27 = vpack.c.bf16 %v1107_v41, %v1103_v37 }
 0x32c   :  { %2001 = vmatprep.subr.bf16.mxu0 %v2000_v53  ;;  %v1079_v53 = vld [vmem:[#allocation5 + $0x358] sm:$0xff]  ;;  %v1121_v41 = vld [vmem:[#allocation5 + $0x4a8] sm:$0xff] }
 0x32d   :  { %2127 = vmatpush1.bf16.msra.mxu1 %v2126_v51  ;;  %v1081_v51 = vld [vmem:[#allocation5 + $0x368] sm:$0xff] }
 0x32e   :  { %2129 = vmatprep.subr.bf16.mxu1 %v2128_v54  ;;  %v2012_v54 = vpack.c.bf16 %v1081_v51, %v1077_v50 }
 0x331   :  { %2131 = vmatpush1.bf16.msra.mxu1 %v2130_v4  ;;  %v1095_v4 = vld [vmem:[#allocation5 + $0x3d8] sm:$0xff] }
 0x332   :  { %2133 = vmatprep.subr.bf16.mxu1 %v2132_v31  ;;  %v2148_v22 = vpack.c.bf16 %v1099_v3, %v1095_v4  ;;  %v2150_v31 = vpack.c.bf16 %v1098_v28, %v1094_v26  ;;  %v1108_v26 = vld [vmem:[#allocation5 + $0x440] sm:$0xff] }
 0x335   :  { %2135 = vmatpush1.bf16.msra.mxu1 %v2134_v39 }
 0x336   :  { %2137 = vmatprep.subr.bf16.mxu1 %v2136_v25 }
 0x339   :  { %2139 = vmatpush1.bf16.msra.mxu1 %v2138_v49 }
 0x39c   :  { %v858_v55 = vpop.xlane.xlu1 %857 }
 0x39d   :  { %v864_v56 = vmul.f32 0.001953125, %v858_v55  ;;  %v1083_v55 = vld [vmem:[#allocation5 + $0x378] sm:$0xff] }
 0x39f   :  { %v2611_v57 = vsub.f32 %v2585_v10, %v864_v56  ;;  %v2614_v58 = vsub.f32 %v2587_v14, %v864_v56  ;;  %v2617_v59 = vsub.f32 %v2590_v24, %v864_v56  ;;  %v2620_v61 = vsub.f32 %v2596_v36, %v864_v56  ;;  %v1076_v56 = vld [vmem:[#allocation5 + $0x340] sm:$0xff] }
 0x3a0   :  { %v863_v60 = vpop.xlane.xlu1 %862 }
 0x3a1   :  { %v865_v18 = vmul.f32 0.001953125, %v863_v60  ;;  %v874_v20 = vmul.f32 %v2611_v57, %v2611_v57  ;;  %v875_v62 = vmul.f32 %v2614_v58, %v2614_v58  ;;  %v876_v10 = vmul.f32 %v2617_v59, %v2617_v59  ;;  %v1080_v60 = vld [vmem:[#allocation5 + $0x360] sm:$0xff] }
 0x3a2   :  { %v877_v15 = vmul.f32 %v2620_v61, %v2620_v61 }
 0x3a3   :  { %v2629_v14 = vsub.f32 %v2594_v35, %v865_v18  ;;  %v2632_v24 = vsub.f32 %v2598_v8, %v865_v18  ;;  %v882_v63 = vadd.f32 %v875_v62, %v874_v20  ;;  %v2635_v36 = vsub.f32 %v2601_v11, %v865_v18  ;;  %v1078_v62 = vld [vmem:[#allocation5 + $0x350] sm:$0xff] }
 0x3a4   :  { %v2640_v21 = vsub.f32 %v2606_v40, %v865_v18  ;;  %v1052_v40 = vld [vmem:[#allocation5 + $0x280] sm:$0xff]  ;;  %v2140_v18 = vpack.c.bf16 %v1083_v55, %v1079_v53  ;;  %v2014_v20 = vpack.c.bf16 %v1080_v60, %v1076_v56  ;;  %v943_v53 = vrot.slane %v524_v48, %v2453_v6 }
 0x3a5   :  { %v883_v0 = vadd.f32 %v882_v63, %v876_v10  ;;  %v878_v1 = vmul.f32 %v2629_v14, %v2629_v14  ;;  %v879_v35 = vmul.f32 %v2632_v24, %v2632_v24  ;;  %v880_v8 = vmul.f32 %v2635_v36, %v2635_v36  ;;  %v1082_v10 = vld [vmem:[#allocation5 + $0x370] sm:$0xff]  ;;  %v1085_v63 = vld [vmem:[#allocation5 + $0x388] sm:$0xff]  ;;  %v1100_v60 = vld [vmem:[#allocation5 + $0x400] sm:$0xff] }
 0x3a6   :  { %v881_v11 = vmul.f32 %v2640_v21, %v2640_v21  ;;  %v2002_v17 = vpack.c.bf16 %v1056_v52, %v1052_v40  ;;  %2141 = vmatprep.subr.bf16.mxu1 %v2140_v18  ;;  %v1090_v40 = vld [vmem:[#allocation5 + $0x3b0] sm:$0xff]  ;;  %v1093_v52 = vld [vmem:[#allocation5 + $0x3c8] sm:$0xff]  ;;  %v939_v56 = vrot.slane %v524_v48, %v2451_v5  ;;  %v1104_v18 = vld [vmem:[#allocation5 + $0x420] sm:$0xff] }
 0x3a7   :  { %v884_v30 = vadd.f32 %v883_v0, %v877_v15  ;;  %v887_v2 = vadd.f32 %v879_v35, %v878_v1  ;;  %v2142_v15 = vpack.c.bf16 %v1082_v10, %v1078_v62  ;;  %v1089_v0 = vld [vmem:[#allocation5 + $0x3a8] sm:$0xff]  ;;  %v1087_v1 = vld [vmem:[#allocation5 + $0x398] sm:$0xff]  ;;  %v2020_v19 = vpack.c.bf16 %v1097_v16, %v1093_v52 }
 0x3a8   :  { %2003 = vmatpush1.bf16.msra.mxu0 %v2002_v17  ;;  %v1091_v35 = vld [vmem:[#allocation5 + $0x3b8] sm:$0xff] }
 0x3a9   :  { %885 = vadd.xlane.f32.xlu1 %v884_v30  ;;  %v888_v12 = vadd.f32 %v887_v2, %v880_v8  ;;  %2005 = vmatprep.subr.bf16.mxu0 %v2004_v23  ;;  %v2016_v30 = vpack.c.bf16 %v1089_v0, %v1085_v63  ;;  %v2144_v8 = vpack.c.bf16 %v1091_v35, %v1087_v1  ;;  %v1084_v2 = vld [vmem:[#allocation5 + $0x380] sm:$0xff]  ;;  %v1102_v1 = vld [vmem:[#allocation5 + $0x410] sm:$0xff] }
 0x3aa   :  { %2143 = vmatpush1.bf16.msra.mxu1 %v2142_v15  ;;  %v1096_v23 = vld [vmem:[#allocation5 + $0x3e0] sm:$0xff]  ;;  %v947_v63 = vrot.slane %v524_v48, %v2455_v7  ;;  %v1106_v35 = vld [vmem:[#allocation5 + $0x430] sm:$0xff] }
 0x3ab   :  { %v889_v13 = vadd.f32 %v888_v12, %v881_v11  ;;  %v1088_v11 = vld [vmem:[#allocation5 + $0x3a0] sm:$0xff]  ;;  %v1086_v12 = vld [vmem:[#allocation5 + $0x390] sm:$0xff]  ;;  %2145 = vmatprep.subr.bf16.mxu1 %v2144_v8  ;;  %v2022_v29 = vpack.c.bf16 %v1096_v23, %v1092_v38  ;;  %v1109_v8 = vld [vmem:[#allocation5 + $0x448] sm:$0xff]  ;;  %v2154_v16 = vpack.c.bf16 %v1106_v35, %v1102_v1 }
 0x3ac   :  { %2007 = vmatpush1.bf16.msra.mxu0 %v2006_v33  ;;  %v2146_v17 = vpack.c.bf16 %v1090_v40, %v1086_v12  ;;  %v1101_v33 = vld [vmem:[#allocation5 + $0x408] sm:$0xff]  ;;  %v1115_v40 = vld [vmem:[#allocation5 + $0x478] sm:$0xff]  ;;  %v1126_v1 = vld [vmem:[#allocation5 + $0x4d0] sm:$0xff] }
 0x3ad   :  { %890 = vadd.xlane.f32.xlu1 %v889_v13  ;;  %2009 = vmatprep.subr.bf16.mxu0 %v2008_v43  ;;  %v2018_v13 = vpack.c.bf16 %v1088_v11, %v1084_v2  ;;  %v2024_v39 = vpack.c.bf16 %v1105_v34, %v1101_v33  ;;  %v2672_v2 = vrot.slane %v524_v48, %v2460_v9  ;;  %v1113_v12 = vld [vmem:[#allocation5 + $0x468] sm:$0xff]  ;;  %v1114_v33 = vld [vmem:[#allocation5 + $0x470] sm:$0xff]  ;;  %v1120_v48 = vld [vmem:[#allocation5 + $0x4a0] sm:$0xff] }
 0x3ae   :  { %2147 = vmatpush1.bf16.msra.mxu1 %v2146_v17  ;;  %v1130_v35 = vld [vmem:[#allocation5 + $0x4f0] sm:$0xff] }
 0x3af   :  { %2149 = vmatprep.subr.bf16.mxu1 %v2148_v22 }
 0x3b0   :  { %2011 = vmatpush1.bf16.msra.mxu0 %v2010_v47  ;;  %v523_v47 = vld [vmem:[%s2735_s7] sm:$0xf] }
 0x3b1   :  { %2013 = vmatprep.subr.bf16.mxu0 %v2012_v54  ;;  %v914_v32 = vrot.slane %v523_v47, %v2453_v6  ;;  %v910_v49 = vrot.slane %v523_v47, %v2451_v5  ;;  %v918_v50 = vrot.slane %v523_v47, %v2455_v7  ;;  %v2666_v10 = vrot.slane %v523_v47, %v2460_v9  ;;  %v1116_v47 = vld [vmem:[#allocation5 + $0x480] sm:$0xff] }
 0x3b2   :  { %2151 = vmatpush1.bf16.msra.mxu1 %v2150_v31  ;;  %v1110_v31 = vld [vmem:[#allocation5 + $0x450] sm:$0xff] }
 0x3b3   :  { %2153 = vmatprep.subr.bf16.mxu1 %v2152_v27  ;;  %v1119_v27 = vld [vmem:[#allocation5 + $0x498] sm:$0xff] }
 0x3b4   :  { %2015 = vmatpush1.bf16.msra.mxu0 %v2014_v20 }
 0x3b5   :  { %2017 = vmatprep.subr.bf16.mxu0 %v2016_v30 }
 0x3b8   :  { %2019 = vmatpush1.bf16.msra.mxu0 %v2018_v13  ;;  %v1111_v13 = vld [vmem:[#allocation5 + $0x458] sm:$0xff] }
 0x3b9   :  { %2021 = vmatprep.subr.bf16.mxu0 %v2020_v19  ;;  %v2156_v28 = vpack.c.bf16 %v1115_v40, %v1111_v13  ;;  %v1136_v13 = vld [vmem:[#allocation5 + $0x520] sm:$0xff] }
 0x3bc   :  { %2023 = vmatpush1.bf16.msra.mxu0 %v2022_v29  ;;  %v1112_v29 = vld [vmem:[#allocation5 + $0x460] sm:$0xff] }
 0x3bd   :  { %2025 = vmatprep.subr.bf16.mxu0 %v2024_v39  ;;  %v1117_v39 = vld [vmem:[#allocation5 + $0x488] sm:$0xff] }
 0x436   :  { %v886_v42 = vpop.xlane.xlu1 %885 }
 0x437   :  { %v892_v43 = vmul.f32 0.001953125, %v886_v42  ;;  %v1123_v42 = vld [vmem:[#allocation5 + $0x4b8] sm:$0xff] }
 0x439   :  { %v894_v44 = vadd.f32 1e-05, %v892_v43 }
 0x43a   :  { %v891_v45 = vpop.xlane.xlu1 %890 }
 0x43b   :  { %2259 = vrsqrt.f32 %v894_v44  ;;  %v893_v46 = vmul.f32 0.001953125, %v891_v45 }
 0x43d   :  { %v895_v25 = vadd.f32 1e-05, %v893_v46  ;;  %v2030_v46 = vpack.c.bf16 %v1112_v29, %v1108_v26 }
 0x43f   :  { %2261 = vrsqrt.f32 %v895_v25  ;;  %v2158_v25 = vpack.c.bf16 %v1114_v33, %v1110_v31  ;;  %v1142_v33 = vld [vmem:[#allocation5 + $0x550] sm:$0xff] }
 0x445   :  { %v2260_v51 = vpop.eup %2259 }
 0x446   :  { %v899_v54 = vmul.f32 %v2260_v51, %v2614_v58  ;;  %v898_v55 = vmul.f32 %v2260_v51, %v2611_v57  ;;  %v900_v20 = vmul.f32 %v2260_v51, %v2617_v59  ;;  %v901_v62 = vmul.f32 %v2260_v51, %v2620_v61 }
 0x447   :  { %v2026_v57 = vpack.c.bf16 %v1104_v18, %v1100_v60  ;;  %v2032_v51 = vpack.c.bf16 %v1121_v41, %v1117_v39  ;;  %v2034_v18 = vpack.c.bf16 %v1120_v48, %v1116_v47  ;;  %v1151_v39 = vld [vmem:[#allocation5 + $0x598] sm:$0xff]  ;;  %v1154_v47 = vld [vmem:[#allocation5 + $0x5b0] sm:$0xff]  ;;  %v1157_v48 = vld [vmem:[#allocation5 + $0x5c8] sm:$0xff] }
 0x448   :  { %v928_v15 = vmul.f32 %v914_v32, %v899_v54  ;;  %v927_v0 = vmul.f32 %v910_v49, %v898_v55  ;;  %v929_v58 = vmul.f32 %v918_v50, %v900_v20  ;;  %v930_v17 = vmul.f32 %v2666_v10, %v901_v62  ;;  %v1129_v54 = vld [vmem:[#allocation5 + $0x4e8] sm:$0xff]  ;;  %v1127_v55 = vld [vmem:[#allocation5 + $0x4d8] sm:$0xff]  ;;  %v1124_v62 = vld [vmem:[#allocation5 + $0x4c0] sm:$0xff] }
 0x449   :  { %v2669_v30 = vpop.eup %2261 }
 0x44a   :  { %v957_v59 = vadd.f32 %v943_v53, %v928_v15  ;;  %v956_v11 = vadd.f32 %v939_v56, %v927_v0  ;;  %v903_v61 = vmul.f32 %v2669_v30, %v2632_v24  ;;  %v902_v52 = vmul.f32 %v2669_v30, %v2629_v14 }
 0x44b   :  { %v2679_v19 = vadd.f32 %v947_v63, %v929_v58  ;;  %v904_v4 = vmul.f32 %v2669_v30, %v2635_v36  ;;  %v2028_v24 = vpack.c.bf16 %v1113_v12, %v1109_v8  ;;  %v959_v36 = vadd.f32 %v2672_v2, %v930_v17  ;;  %v1133_v58 = vld [vmem:[#allocation5 + $0x508] sm:$0xff]  ;;  %v1135_v8 = vld [vmem:[#allocation5 + $0x518] sm:$0xff]  ;;  %v1132_v12 = vld [vmem:[#allocation5 + $0x500] sm:$0xff] }
 0x44c   :  { %v965_v3 = vmax.f32 %v957_v59, 0.0  ;;  %v964_v38 = vmax.f32 %v956_v11, 0.0  ;;  %v932_v22 = vmul.f32 %v914_v32, %v903_v61  ;;  %v931_v23 = vmul.f32 %v910_v49, %v902_v52  ;;  %v1118_v32 = vld [vmem:[#allocation5 + $0x490] sm:$0xff]  ;;  %v1139_v59 = vld [vmem:[#allocation5 + $0x538] sm:$0xff] }
 0x44d   :  { %v933_v34 = vmul.f32 %v918_v50, %v904_v4  ;;  %v1122_v49 = vld [vmem:[#allocation5 + $0x4b0] sm:$0xff]  ;;  %v1125_v50 = vld [vmem:[#allocation5 + $0x4c8] sm:$0xff]  ;;  %v967_v60 = vmax.f32 %v959_v36, 0.0  ;;  %v2166_v61 = vpack.c.bf16 %v1130_v35, %v1126_v1  ;;  %v2168_v52 = vpack.c.bf16 %v1139_v59, %v1135_v8  ;;  %v1155_v36 = vld [vmem:[#allocation5 + $0x5b8] sm:$0xff] }
 0x44e   :  { %1316 = vmatprep.mubr.f32.mxu0 %v965_v3  ;;  %1470 = vmatprep.mubr.f32.mxu1 %v965_v3  ;;  %v961_v14 = vadd.f32 %v943_v53, %v932_v22  ;;  %v960_v37 = vadd.f32 %v939_v56, %v931_v23  ;;  %v2160_v53 = vpack.c.bf16 %v1123_v42, %v1119_v27  ;;  %v1131_v56 = vld [vmem:[#allocation5 + $0x4f8] sm:$0xff]  ;;  %v1138_v17 = vld [vmem:[#allocation5 + $0x530] sm:$0xff]  ;;  %v1141_v4 = vld [vmem:[#allocation5 + $0x548] sm:$0xff] }
 0x44f   :  { %1317 = vmatmul.mubr.f32.vlgmr.msra.gmra.mrb[4].mxu0 %v964_v38  ;;  %1471 = vmatmul.mubr.f32.vlgmr.msra.gmra.mrb[4].mxu1 %v964_v38  ;;  %v2684_v43 = vadd.f32 %v947_v63, %v933_v34  ;;  %v2162_v20 = vpack.c.bf16 %v1122_v49, %v1118_v32  ;;  %v1128_v63 = vld [vmem:[#allocation5 + $0x4e0] sm:$0xff]  ;;  %v2036_v15 = vpack.c.bf16 %v1129_v54, %v1125_v50  ;;  %v1145_v3 = vld [vmem:[#allocation5 + $0x568] sm:$0xff]  ;;  %v1143_v38 = vld [vmem:[#allocation5 + $0x558] sm:$0xff] }
 0x450   :  { %2027 = vmatpush1.bf16.msra.mxu0 %v2026_v57  ;;  %2155 = vmatpush1.bf16.msra.mxu1 %v2154_v16  ;;  %v969_v44 = vmax.f32 %v961_v14, 0.0  ;;  %v968_v45 = vmax.f32 %v960_v37, 0.0  ;;  %v2164_v0 = vpack.c.bf16 %v1131_v56, %v1127_v55  ;;  %v1137_v57 = vld [vmem:[#allocation5 + $0x528] sm:$0xff]  ;;  %v2038_v11 = vpack.c.bf16 %v1128_v63, %v1124_v62  ;;  %v1134_v16 = vld [vmem:[#allocation5 + $0x510] sm:$0xff]  ;;  %v1147_v22 = vld [vmem:[#allocation5 + $0x578] sm:$0xff] }
 0x451   :  { %2029 = vmatprep.subr.bf16.mxu0 %v2028_v24  ;;  %2157 = vmatprep.subr.bf16.mxu1 %v2156_v28  ;;  %v2040_v40 = vpack.c.bf16 %v1137_v57, %v1133_v58  ;;  %v2042_v23 = vpack.c.bf16 %v1136_v13, %v1132_v12  ;;  %v2170_v26 = vpack.c.bf16 %v1138_v17, %v1134_v16  ;;  %v1140_v24 = vld [vmem:[#allocation5 + $0x540] sm:$0xff]  ;;  %v1146_v34 = vld [vmem:[#allocation5 + $0x570] sm:$0xff]  ;;  %v1149_v14 = vld [vmem:[#allocation5 + $0x588] sm:$0xff] }
 0x452   :  { %1322 = vmatprep.mubr.f32.mxu0 %v969_v44  ;;  %1476 = vmatprep.mubr.f32.mxu1 %v969_v44  ;;  %v1144_v28 = vld [vmem:[#allocation5 + $0x560] sm:$0xff]  ;;  %v2044_v29 = vpack.c.bf16 %v1145_v3, %v1141_v4  ;;  %v2172_v31 = vpack.c.bf16 %v1147_v22, %v1143_v38  ;;  %v1153_v37 = vld [vmem:[#allocation5 + $0x5a8] sm:$0xff]  ;;  %v2174_v27 = vpack.c.bf16 %v1146_v34, %v1142_v33  ;;  %v1159_v49 = vld [vmem:[#allocation5 + $0x5d8] sm:$0xff] }
 0x453   :  { %1323 = vmatmul.mubr.f32.gmra.mrb[6].mxu0 %v968_v45  ;;  %1477 = vmatmul.mubr.f32.gmra.mrb[6].mxu1 %v968_v45  ;;  %v2046_v41 = vpack.c.bf16 %v1144_v28, %v1140_v24  ;;  %v1148_v42 = vld [vmem:[#allocation5 + $0x580] sm:$0xff]  ;;  %v2048_v45 = vpack.c.bf16 %v1153_v37, %v1149_v14  ;;  %v1161_v32 = vld [vmem:[#allocation5 + $0x5e8] sm:$0xff]  ;;  %v1163_v50 = vld [vmem:[#allocation5 + $0x5f8] sm:$0xff] }
 0x454   :  { %2031 = vmatpush1.bf16.msra.mxu0 %v2030_v46  ;;  %2159 = vmatpush1.bf16.msra.mxu1 %v2158_v25  ;;  %v1152_v44 = vld [vmem:[#allocation5 + $0x5a0] sm:$0xff]  ;;  %v2176_v46 = vpack.c.bf16 %v1155_v36, %v1151_v39  ;;  %v1150_v25 = vld [vmem:[#allocation5 + $0x590] sm:$0xff]  ;;  %v2052_v56 = vpack.c.bf16 %v1161_v32, %v1157_v48  ;;  %v1165_v62 = vld [vmem:[#allocation5 + $0x608] sm:$0xff] }
 0x455   :  { %1393 = vmatprep.mubr.f32.mxu0 %v967_v60  ;;  %1547 = vmatprep.mubr.f32.mxu1 %v967_v60  ;;  %v1156_v54 = vld [vmem:[#allocation5 + $0x5c0] sm:$0xff]  ;;  %v2180_v60 = vpack.c.bf16 %v1163_v50, %v1159_v49  ;;  %v1169_v63 = vld [vmem:[#allocation5 + $0x628] sm:$0xff] }
 0x456   :  { %2033 = vmatprep.subr.bf16.mxu0 %v2032_v51  ;;  %2161 = vmatprep.subr.bf16.mxu1 %v2160_v53  ;;  %v2050_v51 = vpack.c.bf16 %v1152_v44, %v1148_v42  ;;  %v2178_v53 = vpack.c.bf16 %v1154_v47, %v1150_v25  ;;  %v1160_v55 = vld [vmem:[#allocation5 + $0x5e0] sm:$0xff]  ;;  %v2056_v8 = vpack.c.bf16 %v1169_v63, %v1165_v62  ;;  %v1173_v12 = vld [vmem:[#allocation5 + $0x648] sm:$0xff] }
 0x457   :  { %v2054_v1 = vpack.c.bf16 %v1160_v55, %v1156_v54  ;;  %v1164_v58 = vld [vmem:[#allocation5 + $0x600] sm:$0xff]  ;;  %v1177_v13 = vld [vmem:[#allocation5 + $0x668] sm:$0xff] }
 0x458   :  { %2035 = vmatpush1.bf16.msra.mxu0 %v2034_v18  ;;  %2163 = vmatpush1.bf16.msra.mxu1 %v2162_v20  ;;  %v1158_v18 = vld [vmem:[#allocation5 + $0x5d0] sm:$0xff]  ;;  %v1168_v57 = vld [vmem:[#allocation5 + $0x620] sm:$0xff]  ;;  %v2060_v38 = vpack.c.bf16 %v1177_v13, %v1173_v12  ;;  %v1181_v24 = vld [vmem:[#allocation5 + $0x688] sm:$0xff] }
 0x459   :  { %2037 = vmatprep.subr.bf16.mxu0 %v2036_v15  ;;  %2165 = vmatprep.subr.bf16.mxu1 %v2164_v0  ;;  %v1162_v20 = vld [vmem:[#allocation5 + $0x5f0] sm:$0xff]  ;;  %v1167_v15 = vld [vmem:[#allocation5 + $0x618] sm:$0xff]  ;;  %v2058_v16 = vpack.c.bf16 %v1168_v57, %v1164_v58  ;;  %v1172_v4 = vld [vmem:[#allocation5 + $0x640] sm:$0xff] }
 0x45a   :  { %v1171_v0 = vld [vmem:[#allocation5 + $0x638] sm:$0xff]  ;;  %v2182_v35 = vpack.c.bf16 %v1162_v20, %v1158_v18  ;;  %v1176_v3 = vld [vmem:[#allocation5 + $0x660] sm:$0xff]  ;;  %v1185_v28 = vld [vmem:[#allocation5 + $0x6a8] sm:$0xff] }
 0x45b   :  { %v2184_v59 = vpack.c.bf16 %v1171_v0, %v1167_v15  ;;  %v2062_v33 = vpack.c.bf16 %v1176_v3, %v1172_v4  ;;  %v1180_v14 = vld [vmem:[#allocation5 + $0x680] sm:$0xff]  ;;  %v2064_v39 = vpack.c.bf16 %v1185_v28, %v1181_v24  ;;  %v1189_v42 = vld [vmem:[#allocation5 + $0x6c8] sm:$0xff] }
 0x45c   :  { %2039 = vmatpush1.bf16.msra.mxu0 %v2038_v11  ;;  %2167 = vmatpush1.bf16.msra.mxu1 %v2166_v61  ;;  %v1166_v11 = vld [vmem:[#allocation5 + $0x610] sm:$0xff]  ;;  %v1184_v37 = vld [vmem:[#allocation5 + $0x6a0] sm:$0xff]  ;;  %v1193_v44 = vld [vmem:[#allocation5 + $0x6e8] sm:$0xff] }
 0x45d   :  { %2041 = vmatprep.subr.bf16.mxu0 %v2040_v40  ;;  %2169 = vmatprep.subr.bf16.mxu1 %v2168_v52  ;;  %v1170_v61 = vld [vmem:[#allocation5 + $0x630] sm:$0xff]  ;;  %v1175_v40 = vld [vmem:[#allocation5 + $0x658] sm:$0xff]  ;;  %v2066_v25 = vpack.c.bf16 %v1184_v37, %v1180_v14  ;;  %v1188_v48 = vld [vmem:[#allocation5 + $0x6c0] sm:$0xff]  ;;  %v2068_v49 = vpack.c.bf16 %v1193_v44, %v1189_v42 }
 0x45e   :  { %v1179_v52 = vld [vmem:[#allocation5 + $0x678] sm:$0xff]  ;;  %v2186_v17 = vpack.c.bf16 %v1170_v61, %v1166_v11  ;;  %v1192_v32 = vld [vmem:[#allocation5 + $0x6e0] sm:$0xff]  ;;  %v1197_v54 = vld [vmem:[#allocation5 + $0x708] sm:$0xff] }
 0x45f   :  { %v2188_v22 = vpack.c.bf16 %v1179_v52, %v1175_v40  ;;  %v1201_v55 = vld [vmem:[#allocation5 + $0x728] sm:$0xff]  ;;  %v2070_v18 = vpack.c.bf16 %v1192_v32, %v1188_v48  ;;  %v1196_v62 = vld [vmem:[#allocation5 + $0x700] sm:$0xff]  ;;  %v1226_v48 = vld [vmem:[#allocation5 + $0x7f0] sm:$0xff] }
 0x460   :  { %2043 = vmatpush1.bf16.msra.mxu0 %v2042_v23  ;;  %2171 = vmatpush1.bf16.msra.mxu1 %v2170_v26  ;;  %v1174_v23 = vld [vmem:[#allocation5 + $0x650] sm:$0xff]  ;;  %v1200_v63 = vld [vmem:[#allocation5 + $0x720] sm:$0xff]  ;;  %v2072_v15 = vpack.c.bf16 %v1201_v55, %v1197_v54  ;;  %v1205_v58 = vld [vmem:[#allocation5 + $0x748] sm:$0xff] }
 0x461   :  { %2045 = vmatprep.subr.bf16.mxu0 %v2044_v29  ;;  %2173 = vmatprep.subr.bf16.mxu1 %v2172_v31  ;;  %v1178_v26 = vld [vmem:[#allocation5 + $0x670] sm:$0xff]  ;;  %v1183_v29 = vld [vmem:[#allocation5 + $0x698] sm:$0xff]  ;;  %v1209_v57 = vld [vmem:[#allocation5 + $0x768] sm:$0xff]  ;;  %v2074_v11 = vpack.c.bf16 %v1200_v63, %v1196_v62 }
 0x462   :  { %v1187_v31 = vld [vmem:[#allocation5 + $0x6b8] sm:$0xff]  ;;  %v2190_v34 = vpack.c.bf16 %v1178_v26, %v1174_v23  ;;  %v1204_v12 = vld [vmem:[#allocation5 + $0x740] sm:$0xff]  ;;  %v2076_v40 = vpack.c.bf16 %v1209_v57, %v1205_v58  ;;  %v1213_v4 = vld [vmem:[#allocation5 + $0x788] sm:$0xff] }
 0x463   :  { %v2192_v36 = vpack.c.bf16 %v1187_v31, %v1183_v29  ;;  %v1208_v13 = vld [vmem:[#allocation5 + $0x760] sm:$0xff]  ;;  %v1217_v3 = vld [vmem:[#allocation5 + $0x7a8] sm:$0xff] }
 0x464   :  { %2047 = vmatpush1.bf16.msra.mxu0 %v2046_v41  ;;  %2175 = vmatpush1.bf16.msra.mxu1 %v2174_v27  ;;  %v1182_v41 = vld [vmem:[#allocation5 + $0x690] sm:$0xff]  ;;  %v2078_v23 = vpack.c.bf16 %v1208_v13, %v1204_v12  ;;  %v1212_v24 = vld [vmem:[#allocation5 + $0x780] sm:$0xff]  ;;  %v2080_v29 = vpack.c.bf16 %v1217_v3, %v1213_v4  ;;  %v1221_v14 = vld [vmem:[#allocation5 + $0x7c8] sm:$0xff] }
 0x465   :  { %2049 = vmatprep.subr.bf16.mxu0 %v2048_v45  ;;  %2177 = vmatprep.subr.bf16.mxu1 %v2176_v46  ;;  %v1186_v27 = vld [vmem:[#allocation5 + $0x6b0] sm:$0xff]  ;;  %v1191_v45 = vld [vmem:[#allocation5 + $0x6d8] sm:$0xff]  ;;  %v1216_v28 = vld [vmem:[#allocation5 + $0x7a0] sm:$0xff] }
 0x466   :  { %v1195_v46 = vld [vmem:[#allocation5 + $0x6f8] sm:$0xff]  ;;  %v2194_v47 = vpack.c.bf16 %v1186_v27, %v1182_v41  ;;  %v1225_v37 = vld [vmem:[#allocation5 + $0x7e8] sm:$0xff]  ;;  %v905_v41 = vmul.f32 %v2669_v30, %v2640_v21  ;;  %v2082_v27 = vpack.c.bf16 %v1216_v28, %v1212_v24  ;;  %v1220_v44 = vld [vmem:[#allocation5 + $0x7c0] sm:$0xff]  ;;  %v966_v30 = vmax.f32 %v2679_v19, 0.0 }
 0x467   :  { %v2196_v50 = vpack.c.bf16 %v1195_v46, %v1191_v45  ;;  %v2084_v45 = vpack.c.bf16 %v1225_v37, %v1221_v14 }
 0x468   :  { %2051 = vmatpush1.bf16.msra.mxu0 %v2050_v51  ;;  %2179 = vmatpush1.bf16.msra.mxu1 %v2178_v53  ;;  %v1190_v51 = vld [vmem:[#allocation5 + $0x6d0] sm:$0xff]  ;;  %v934_v32 = vmul.f32 %v2666_v10, %v905_v41  ;;  %v1228_v10 = vld [vmem:[%s2738_s10] sm:$0xf] }
 0x469   :  { %2053 = vmatprep.subr.bf16.mxu0 %v2052_v56  ;;  %2181 = vmatprep.subr.bf16.mxu1 %v2180_v60  ;;  %v1194_v53 = vld [vmem:[#allocation5 + $0x6f0] sm:$0xff]  ;;  %v1199_v56 = vld [vmem:[#allocation5 + $0x718] sm:$0xff]  ;;  %v1235_v54 = vrot.slane %v1228_v10, %v2451_v5  ;;  %v1243_v19 = vrot.slane %v1228_v10, %v2455_v7 }
 0x46a   :  { %v1203_v60 = vld [vmem:[#allocation5 + $0x738] sm:$0xff]  ;;  %v2198_v20 = vpack.c.bf16 %v1194_v53, %v1190_v51  ;;  %v963_v21 = vadd.f32 %v2672_v2, %v934_v32  ;;  %v970_v53 = vmax.f32 %v2684_v43, 0.0  ;;  %v1239_v2 = vrot.slane %v1228_v10, %v2453_v6 }
 0x46b   :  { %v2200_v0 = vpack.c.bf16 %v1203_v60, %v1199_v56  ;;  %v1247_v43 = vrot.slane %v1228_v10, %v2460_v9  ;;  %v1230_v10 = vld [vmem:[%s2740_s12] sm:$0xf] }
 0x46c   :  { %2055 = vmatpush1.bf16.msra.mxu0 %v2054_v1  ;;  %2183 = vmatpush1.bf16.msra.mxu1 %v2182_v35  ;;  %v1198_v1 = vld [vmem:[#allocation5 + $0x710] sm:$0xff]  ;;  %v971_v51 = vmax.f32 %v963_v21, 0.0 }
 0x46d   :  { %2057 = vmatprep.subr.bf16.mxu0 %v2056_v8  ;;  %2185 = vmatprep.subr.bf16.mxu1 %v2184_v59  ;;  %v1202_v35 = vld [vmem:[#allocation5 + $0x730] sm:$0xff]  ;;  %v1207_v8 = vld [vmem:[#allocation5 + $0x758] sm:$0xff] }
 0x46e   :  { %v1211_v59 = vld [vmem:[#allocation5 + $0x778] sm:$0xff]  ;;  %v2202_v61 = vpack.c.bf16 %v1202_v35, %v1198_v1 }
 0x46f   :  { %v2204_v52 = vpack.c.bf16 %v1211_v59, %v1207_v8 }
 0x470   :  { %2059 = vmatpush1.bf16.msra.mxu0 %v2058_v16  ;;  %2187 = vmatpush1.bf16.msra.mxu1 %v2186_v17  ;;  %v1206_v16 = vld [vmem:[#allocation5 + $0x750] sm:$0xff] }
 0x471   :  { %2061 = vmatprep.subr.bf16.mxu0 %v2060_v38  ;;  %2189 = vmatprep.subr.bf16.mxu1 %v2188_v22  ;;  %v1210_v17 = vld [vmem:[#allocation5 + $0x770] sm:$0xff]  ;;  %v1215_v38 = vld [vmem:[#allocation5 + $0x798] sm:$0xff] }
 0x472   :  { %v1219_v22 = vld [vmem:[#allocation5 + $0x7b8] sm:$0xff]  ;;  %v2206_v26 = vpack.c.bf16 %v1210_v17, %v1206_v16 }
 0x473   :  { %v2208_v31 = vpack.c.bf16 %v1219_v22, %v1215_v38 }
 0x474   :  { %2063 = vmatpush1.bf16.msra.mxu0 %v2062_v33  ;;  %2191 = vmatpush1.bf16.msra.mxu1 %v2190_v34  ;;  %v1214_v33 = vld [vmem:[#allocation5 + $0x790] sm:$0xff] }
 0x475   :  { %2065 = vmatprep.subr.bf16.mxu0 %v2064_v39  ;;  %2193 = vmatprep.subr.bf16.mxu1 %v2192_v36  ;;  %v1218_v34 = vld [vmem:[#allocation5 + $0x7b0] sm:$0xff]  ;;  %v1223_v39 = vld [vmem:[#allocation5 + $0x7d8] sm:$0xff] }
 0x476   :  { %v1227_v36 = vld [vmem:[#allocation5 + $0x7f8] sm:$0xff]  ;;  %v2210_v42 = vpack.c.bf16 %v1218_v34, %v1214_v33 }
 0x477   :  { %v2212_v46 = vpack.c.bf16 %v1227_v36, %v1223_v39 }
 0x478   :  { %2067 = vmatpush1.bf16.msra.mxu0 %v2066_v25  ;;  %2195 = vmatpush1.bf16.msra.mxu1 %v2194_v47  ;;  %v1224_v25 = vld [vmem:[#allocation5 + $0x7e0] sm:$0xff]  ;;  %v1222_v47 = vld [vmem:[#allocation5 + $0x7d0] sm:$0xff] }
 0x479   :  { %2069 = vmatprep.subr.bf16.mxu0 %v2068_v49  ;;  %2197 = vmatprep.subr.bf16.mxu1 %v2196_v50  ;;  %v2086_v49 = vpack.c.bf16 %v1224_v25, %v1220_v44  ;;  %v2214_v50 = vpack.c.bf16 %v1226_v48, %v1222_v47 }
 0x47c   :  { %2071 = vmatpush1.bf16.msra.mxu0 %v2070_v18  ;;  %2199 = vmatpush1.bf16.msra.mxu1 %v2198_v20 }
 0x47d   :  { %2073 = vmatprep.subr.bf16.mxu0 %v2072_v15  ;;  %2201 = vmatprep.subr.bf16.mxu1 %v2200_v0 }
 0x480   :  { %2075 = vmatpush1.bf16.msra.mxu0 %v2074_v11  ;;  %2203 = vmatpush1.bf16.msra.mxu1 %v2202_v61 }
 0x481   :  { %2077 = vmatprep.subr.bf16.mxu0 %v2076_v40  ;;  %2205 = vmatprep.subr.bf16.mxu1 %v2204_v52 }
 0x484   :  { %2079 = vmatpush1.bf16.msra.mxu0 %v2078_v23  ;;  %2207 = vmatpush1.bf16.msra.mxu1 %v2206_v26 }
 0x485   :  { %2081 = vmatprep.subr.bf16.mxu0 %v2080_v29  ;;  %2209 = vmatprep.subr.bf16.mxu1 %v2208_v31 }
 0x488   :  { %2083 = vmatpush1.bf16.msra.mxu0 %v2082_v27  ;;  %2211 = vmatpush1.bf16.msra.mxu1 %v2210_v42 }
 0x489   :  { %2085 = vmatprep.subr.bf16.mxu0 %v2084_v45  ;;  %2213 = vmatprep.subr.bf16.mxu1 %v2212_v46 }
 0x48c   :  { %2087 = vmatpush1.bf16.msra.mxu0 %v2086_v49  ;;  %2215 = vmatpush1.bf16.msra.mxu1 %v2214_v50 }
 0x48f   :  { %1394 = vmatmul.mubr.f32.vlgmr.msra.gmra.mrb[4].mxu0 %v966_v30  ;;  %1548 = vmatmul.mubr.f32.vlgmr.msra.gmra.mrb[4].mxu1 %v966_v30 }
 0x490   :  { %1399 = vmatprep.mubr.f32.mxu0 %v971_v51  ;;  %1553 = vmatprep.mubr.f32.mxu1 %v971_v51 }
 0x493   :  { %1400 = vmatmul.mubr.f32.gmra.mrb[6].mxu0 %v970_v53  ;;  %1554 = vmatmul.mubr.f32.gmra.mrb[6].mxu1 %v970_v53  ;;  %v1229_v53 = vld [vmem:[%s2739_s11] sm:$0xf]  ;;  %s2344_s11 = smov [#allocation7]  }
 0x494   :  { %s1691_s12 = sshll.u32 %s2344_s11, 4  ;;  %s1692_s12 = int_to_ptr.vmem [resolvable:$true] %s1691_s12 }
 0x495   :  { %s2311_s5 = scalar_lea.vmem %s1692_s12, 1024  ;;  %p2316_p3 = scmp.lt.s32.totalorder %s1692_s12, %s1692_s12 }
 0x496   :  { %p2312_p2 = scmp.ne.s32.totalorder %s1692_s12, %s2311_s5  ;;  %p2317_p4 = scmp.lt.s32.totalorder %s2311_s5, %s2311_s5 }
 0x498   :  { %p2318_p5 = por %p2317_p4, %p2316_p3 }
 0x49a   :  { %p2319_p6 = pnand %p2318_p5, %p2312_p2 }
 0x562   :  { %v1395_v55 = vpop.f32.mrb[4].mxu0  ;;  %v1549_v56 = vpop.f32.mrb[4].mxu1 }
 0x563   :  { %v2224_v60 = vadd.f32 %v1395_v55, %v1235_v54  ;;  %v1397_v18 = vpop.f32.mrb[5].mxu0  ;;  %v1551_v20 = vpop.f32.mrb[5].mxu1  ;;  %v2228_v63 = vadd.f32 %v1549_v56, %v1243_v19  ;;  %v1624_v55 = vrot.slane %v1229_v53, %v2455_v7 }
 0x564   :  { %v2225_v62 = vadd.f32 %v1397_v18, %v1239_v2  ;;  %v2229_v8 = vadd.f32 %v1551_v20, %v1247_v43 }
 0x566   :  { %v1560_v15 = vadd.f32 %v2225_v62, %v2224_v60  ;;  %v1401_v0 = vpop.f32.mrb[6].mxu0  ;;  %v1555_v1 = vpop.f32.mrb[6].mxu1 }
 0x567   :  { %v2226_v35 = vadd.f32 %v1401_v0, %v1235_v54  ;;  %v1403_v58 = vpop.f32.mrb[7].mxu0  ;;  %v1557_v57 = vpop.f32.mrb[7].mxu1  ;;  %v2230_v61 = vadd.f32 %v1555_v1, %v1243_v19  ;;  %v1616_v54 = vrot.slane %v1229_v53, %v2451_v5  ;;  %v1628_v19 = vrot.slane %v1229_v53, %v2460_v9 }
 0x568   :  { %v2227_v59 = vadd.f32 %v1403_v58, %v1239_v2  ;;  %v1561_v11 = vadd.f32 %v2228_v63, %v1560_v15  ;;  %v2231_v40 = vadd.f32 %v1557_v57, %v1247_v43  ;;  %v1620_v2 = vrot.slane %v1229_v53, %v2453_v6 }
 0x569   :  { %v1645_v43 = vrot.slane %v1230_v10, %v2451_v5  ;;  %v1653_v15 = vrot.slane %v1230_v10, %v2455_v7  ;;  %v1657_v0 = vrot.slane %v1230_v10, %v2460_v9 }
 0x56a   :  { %v1565_v12 = vadd.f32 %v2227_v59, %v2226_v35  ;;  %v1562_v13 = vadd.f32 %v2229_v8, %v1561_v11 }
 0x56c   :  { %1563 = vadd.xlane.f32.xlu1 %v1562_v13  ;;  %v1566_v52 = vadd.f32 %v2230_v61, %v1565_v12 }
 0x56e   :  { %v1567_v16 = vadd.f32 %v2231_v40, %v1566_v52 }
 0x570   :  { %1568 = vadd.xlane.f32.xlu1 %v1567_v16 }
 0x5f9   :  { %v1564_v17 = vpop.xlane.xlu1 %1563 }
 0x5fa   :  { %v1570_v4 = vmul.f32 0.001953125, %v1564_v17 }
 0x5fc   :  { %v1572_v3 = vsub.f32 %v2224_v60, %v1570_v4  ;;  %v1573_v38 = vsub.f32 %v2225_v62, %v1570_v4  ;;  %v1574_v22 = vsub.f32 %v2228_v63, %v1570_v4  ;;  %v1575_v26 = vsub.f32 %v2229_v8, %v1570_v4 }
 0x5fd   :  { %v1569_v23 = vpop.xlane.xlu1 %1568  ;;  %v1649_v63 = vrot.slane %v1230_v10, %v2453_v6 }
 0x5fe   :  { %v1571_v24 = vmul.f32 0.001953125, %v1569_v23  ;;  %v1580_v28 = vmul.f32 %v1572_v3, %v1572_v3  ;;  %v1581_v29 = vmul.f32 %v1573_v38, %v1573_v38  ;;  %v1582_v31 = vmul.f32 %v1574_v22, %v1574_v22 }
 0x5ff   :  { %v1583_v39 = vmul.f32 %v1575_v26, %v1575_v26 }
 0x600   :  { %v1576_v33 = vsub.f32 %v2226_v35, %v1571_v24  ;;  %v1577_v34 = vsub.f32 %v2227_v59, %v1571_v24  ;;  %v1588_v14 = vadd.f32 %v1581_v29, %v1580_v28  ;;  %v1578_v37 = vsub.f32 %v2230_v61, %v1571_v24 }
 0x601   :  { %v1579_v41 = vsub.f32 %v2231_v40, %v1571_v24 }
 0x602   :  { %v1589_v36 = vadd.f32 %v1588_v14, %v1582_v31  ;;  %v1584_v27 = vmul.f32 %v1576_v33, %v1576_v33  ;;  %v1585_v42 = vmul.f32 %v1577_v34, %v1577_v34  ;;  %v1586_v45 = vmul.f32 %v1578_v37, %v1578_v37 }
 0x603   :  { %v1587_v25 = vmul.f32 %v1579_v41, %v1579_v41 }
 0x604   :  { %v1590_v44 = vadd.f32 %v1589_v36, %v1583_v39  ;;  %v1593_v46 = vadd.f32 %v1585_v42, %v1584_v27 }
 0x606   :  { %1591 = vadd.xlane.f32.xlu1 %v1590_v44  ;;  %v1594_v47 = vadd.f32 %v1593_v46, %v1586_v45 }
 0x608   :  { %v1595_v48 = vadd.f32 %v1594_v47, %v1587_v25 }
 0x60a   :  { %1596 = vadd.xlane.f32.xlu0 %v1595_v48 }
 0x693   :  { %v1592_v32 = vpop.xlane.xlu1 %1591 }
 0x694   :  { %v1598_v49 = vmul.f32 0.001953125, %v1592_v32 }
 0x696   :  { %v1600_v50 = vadd.f32 1e-05, %v1598_v49 }
 0x697   :  { %v1597_v21 = vpop.xlane.xlu0 %1596 }
 0x698   :  { %2263 = vrsqrt.f32 %v1600_v50  ;;  %v1599_v30 = vmul.f32 0.001953125, %v1597_v21 }
 0x69a   :  { %v1601_v51 = vadd.f32 1e-05, %v1599_v30 }
 0x69c   :  { %2265 = vrsqrt.f32 %v1601_v51 }
 0x6a2   :  { %v2264_v56 = vpop.eup %2263 }
 0x6a3   :  { %v1604_v60 = vmul.f32 %v2264_v56, %v1572_v3  ;;  %v1605_v18 = vmul.f32 %v2264_v56, %v1573_v38  ;;  %v1606_v20 = vmul.f32 %v2264_v56, %v1574_v22  ;;  %v1607_v62 = vmul.f32 %v2264_v56, %v1575_v26 }
 0x6a5   :  { %v1633_v1 = vmul.f32 %v1616_v54, %v1604_v60  ;;  %v1634_v35 = vmul.f32 %v1620_v2, %v1605_v18  ;;  %v1635_v58 = vmul.f32 %v1624_v55, %v1606_v20  ;;  %v1636_v57 = vmul.f32 %v1628_v19, %v1607_v62 }
 0x6a6   :  { %v2266_v8 = vpop.eup %2265 }
 0x6a7   :  { %v1608_v59 = vmul.f32 %v2266_v8, %v1576_v33  ;;  %v1609_v11 = vmul.f32 %v2266_v8, %v1577_v34  ;;  %v1610_v61 = vmul.f32 %v2266_v8, %v1578_v37  ;;  %v1611_v12 = vmul.f32 %v2266_v8, %v1579_v41 }
 0x6a8   :  { %v1662_v13 = vadd.f32 %v1645_v43, %v1633_v1  ;;  %v1663_v40 = vadd.f32 %v1649_v63, %v1634_v35  ;;  %v1664_v52 = vadd.f32 %v1653_v15, %v1635_v58  ;;  %v1665_v16 = vadd.f32 %v1657_v0, %v1636_v57 }
 0x6a9   :  { %v1637_v5 = vmul.f32 %v1616_v54, %v1608_v59  ;;  %v1638_v17 = vmul.f32 %v1620_v2, %v1609_v11  ;;  %v1639_v6 = vmul.f32 %v1624_v55, %v1610_v61  ;;  %v1640_v4 = vmul.f32 %v1628_v19, %v1611_v12 }
 0x6aa   :  { %v1670_v7 = vmax.f32 %v1662_v13, 0.0  ;;  %v1671_v3 = vmax.f32 %v1663_v40, 0.0  ;;  %v1672_v9 = vmax.f32 %v1664_v52, 0.0  ;;  %v1673_v38 = vmax.f32 %v1665_v16, 0.0 }
 0x6ab   :  { %v1666_v22 = vadd.f32 %v1645_v43, %v1637_v5  ;;  %v1667_v23 = vadd.f32 %v1649_v63, %v1638_v17  ;;  %v1668_v26 = vadd.f32 %v1653_v15, %v1639_v6  ;;  %v1669_v24 = vadd.f32 %v1657_v0, %v1640_v4 }
 0x6ac   :  { %1678 = vst [vmem:[#allocation7] sm:$0xff] %v1670_v7  ;;  %1679 = vst [vmem:[#allocation7 + $0x8] sm:$0xff] %v1671_v3 }
 0x6ad   :  { %1680 = vst [vmem:[#allocation7 + $0x10] sm:$0xff] %v1672_v9  ;;  %1681 = vst [vmem:[#allocation7 + $0x18] sm:$0xff] %v1673_v38  ;;  %v1674_v28 = vmax.f32 %v1666_v22, 0.0  ;;  %v1675_v29 = vmax.f32 %v1667_v23, 0.0  ;;  %v1676_v31 = vmax.f32 %v1668_v26, 0.0  ;;  %v1677_v33 = vmax.f32 %v1669_v24, 0.0 }
 0x6af   :  { %1682 = vst [vmem:[#allocation7 + $0x20] sm:$0xff] %v1674_v28  ;;  %1683 = vst [vmem:[#allocation7 + $0x28] sm:$0xff] %v1675_v29 }
 0x6b0   :  { %1684 = vst [vmem:[#allocation7 + $0x30] sm:$0xff] %v1676_v31  ;;  %1685 = vst [vmem:[#allocation7 + $0x38] sm:$0xff] %v1677_v33 }
 0x6b1   :  { %2322 = shalt.err (!%p2319_p6)
}
 0x6b2   :  { %s2323_s17 = scalar_lea.hbm %s2741_s13, 1024 }
 0x6b3   :  { %p2324_p7 = scmp.ne.s32.totalorder %s2741_s13, %s2323_s17  ;;  %p2327_p8 = scmp.lt.u32.totalorder %s2323_s17, %s2741_s13 }
 0x6b5   :  { %p2329_p9 = pnand %p2327_p8, %p2324_p7 }
 0x6b7   :  { %2332 = shalt.err (!%p2329_p9)
}
 0x6b8   :  { %1697 = dma.vmem_to_hbm [thread:$0]  %s1692_s12, 1024, %s2741_s13, [#allocation4], %s2340_s18, %s2340_s18, %s2341_s19  }
 0x6b9   :  { %2337 = dma.done.wait [#allocation4], 1024  }
 0x6ba   :  { %2338 = vsyncadd [#allocation4], 4294966272 }
 0x6bb   :  { %1701 = vsyncpa [#allocation3], 1 }
 0x6bc   :  { %1702 = vsyncpa [#allocation6], 1 }
 0x6bd   :  { %1703 = vsyncpa [#allocation4], 1 }

</bundles_post_ra>
